<compile_context>
chip_gen: v5e
topology: v5e:2x2
jax: 0.10.0
libtpu: 0.0.40
codegen_flags: <defaults>
</compile_context>

<pallas_src>
import jax
import jax.numpy as jnp
import numpy as np
from jax import lax
from jax.experimental import pallas as pl
from jax.experimental.pallas import tpu as pltpu

K = 5      # kernel_size of both transposed convs
PAD = 2    # padding of both transposed convs
CG = 16    # fc channel-group tile (of the 64 output channels)


# --------------------------- Pallas kernels ---------------------------------

def _fc_kernel(x_ref, w_ref, b_ref, o_ref):
    # x: (B, latent) bf16, w: (CG, latent, L2) bf16 (channel-major),
    # b: (CG, 1, L2) f32, o: (B, CG, L2) f32.
    # One small MXU matmul per channel keeps L2 on lanes / channels on
    # sublanes, so the conv layout is produced directly (no reshape later).
    x = x_ref[...]
    cg = w_ref.shape[0]
    for c in range(cg):
        o_ref[:, c, :] = (
            jnp.dot(x, w_ref[c], preferred_element_type=jnp.float32)
            + b_ref[c]
        )


def _deconv_up_sig_kernel(x_ref, w1_ref, b1_ref, w2_ref, b2_ref, o_ref, y1_ref):
    # Fused: deconv1(+bias,ReLU) -> 2x nearest upsample -> deconv2(+bias) -> sigmoid
    # x_ref : (1, 64, L2) f32   fc output for one batch element
    # w1_ref: (K, 32, 64) f32   deconv1 as conv: tap k -> input offset k-PAD
    # b1_ref: (32, 1)     f32
    # w2_ref: (3, 2, 32)  f32   fused upsample+deconv2: tap t -> y1 offset t-1,
    #                           rows = (even phase, odd phase)
    # b2_ref: (1, 1)      f32
    # o_ref : (1, 2, L2)  f32   (even, odd) phases of the final output
    # y1_ref: VMEM scratch (32, L2) f32
    x = x_ref[0]                                   # (64, L2)
    L2 = x.shape[1]

    # ---------------- deconv1 (5-tap conv) + bias + ReLU ----------------
    # Interior columns: accumulate circularly rolled per-tap matmul OUTPUTS
    # (roll on (32, L2), XLU slot).  Edge columns polluted by the wrap-around
    # are recomputed exactly below -> no full-width masking.
    acc = jnp.dot(w1_ref[PAD], x, preferred_element_type=jnp.float32)
    for k in range(K):
        d = k - PAD
        if d == 0:
            continue
        p = jnp.dot(w1_ref[k], x, preferred_element_type=jnp.float32)
        acc = acc + pltpu.roll(p, shift=(-d) % L2, axis=1)   # shift >= 0
    y1_ref[...] = jnp.maximum(acc + b1_ref[...], 0.0)

    def conv1_col(l):  # exact column l of deconv1 (pre bias/ReLU), shape (32, 1)
        r = None
        for k in range(K):
            j = l + k - PAD
            if 0 <= j < L2:
                t = jnp.dot(w1_ref[k], x[:, j:j + 1],
                            preferred_element_type=jnp.float32)
                r = t if r is None else r + t
        return r

    for l in (0, 1, L2 - 2, L2 - 1):               # fix wrapped edge columns
        y1_ref[:, l:l + 1] = jnp.maximum(conv1_col(l) + b1_ref[...], 0.0)

    # -------- fused 2x nearest upsample + deconv2 + sigmoid --------
    # With u[2j+e] = y1[j], the 5-tap conv over u becomes two 3-tap convs
    # over y1 (even / odd phases), both with 1-column zero padding.
    y1 = y1_ref[...]                               # (32, L2)
    acc2 = jnp.dot(w2_ref[1], y1, preferred_element_type=jnp.float32)   # (2, L2)
    for t, d in ((0, -1), (2, 1)):
        p = jnp.dot(w2_ref[t], y1, preferred_element_type=jnp.float32)
        acc2 = acc2 + pltpu.roll(p, shift=(-d) % L2, axis=1)
    z = acc2 + b2_ref[...]
    # sigmoid: exp on EUP; approx reciprocal also on EUP
    o_ref[0] = pl.reciprocal(1.0 + jnp.exp(-z), approx=True)

    def conv2_col(l):  # exact column l of the phase conv (pre bias), shape (2, 1)
        r = None
        for t in range(3):
            j = l + t - 1
            if 0 <= j < L2:
                v = jnp.dot(w2_ref[t], y1[:, j:j + 1],
                            preferred_element_type=jnp.float32)
                r = v if r is None else r + v
        return r

    for l in (0, L2 - 1):                          # fix wrapped edge columns
        zc = conv2_col(l) + b2_ref[...]
        o_ref[0, :, l:l + 1] = pl.reciprocal(1.0 + jnp.exp(-zc), approx=True)


# ------------------------------ wrapper --------------------------------------

def gen_coder_decoder_forward(x, prep, output_length):
    """prep = prepare_params(raw_params, output_length)."""
    w_fc_cm, b_fc_cm, w1t, b1, w_eo, b2 = prep
    B, latent = x.shape
    L = output_length
    L2 = L // 2
    assert L == 2 * L2 and L2 >= 8, "output_length must be even and >= 16"
    n_ch = w_fc_cm.shape[0]                      # 64
    cg = CG if n_ch % CG == 0 else n_ch

    x_bf = x.astype(jnp.bfloat16)                # tiny; weight already bf16

    # ---- fc: (B, latent) -> (B, 64, L2) directly (channel-grouped stream) ----
    h = pl.pallas_call(
        _fc_kernel,
        out_shape=jax.ShapeDtypeStruct((B, n_ch, L2), jnp.float32),
        grid=(n_ch // cg,),
        in_specs=[
            pl.BlockSpec((B, latent), lambda i: (0, 0)),
            pl.BlockSpec((cg, latent, L2), lambda i: (i, 0, 0)),
            pl.BlockSpec((cg, 1, L2), lambda i: (i, 0, 0)),
        ],
        out_specs=pl.BlockSpec((B, cg, L2), lambda i: (0, i, 0)),
        compiler_params=pltpu.CompilerParams(
            dimension_semantics=("parallel",)),
    )(x_bf, w_fc_cm, b_fc_cm)

    # ---- fused deconv1+ReLU -> upsample -> deconv2 -> sigmoid, per batch ----
    # (On v7x with B=1, a second parallel axis would keep both TCs busy.)
    out_eo = pl.pallas_call(
        _deconv_up_sig_kernel,
        out_shape=jax.ShapeDtypeStruct((B, 2, L2), jnp.float32),
        grid=(B,),
        in_specs=[
            pl.BlockSpec((1, n_ch, L2), lambda b: (b, 0, 0)),
            pl.BlockSpec((K, 32, n_ch), lambda b: (0, 0, 0)),
            pl.BlockSpec((32, 1), lambda b: (0, 0)),
            pl.BlockSpec((3, 2, 32), lambda b: (0, 0, 0)),
            pl.BlockSpec((1, 1), lambda b: (0, 0)),
        ],
        out_specs=pl.BlockSpec((1, 2, L2), lambda b: (b, 0, 0)),
        scratch_shapes=[pltpu.VMEM((32, L2), jnp.float32)],
        compiler_params=pltpu.CompilerParams(
            dimension_semantics=("parallel",)),
    )(h, w1t, b1, w_eo, b2)

    # interleave phases: out[b, 0, 2j+e] = out_eo[b, e, j]  (tiny final array)
    return jnp.transpose(out_eo, (0, 2, 1)).reshape(B, 1, L)


# ---------------------- parameter init & preparation -------------------------

def init_params(key, output_length, latent_dim):
    """PyTorch-layout parameters (Linear weight transposed for x @ W)."""
    L2 = output_length // 2
    F = L2 * 64
    ks = jax.random.split(key, 6)
    w_fc = jax.random.normal(ks[0], (latent_dim, F), jnp.float32) * 0.05
    b_fc = jax.random.normal(ks[1], (F,), jnp.float32) * 0.02
    w_dc1 = jax.random.normal(ks[2], (64, 32, K), jnp.float32) * 0.05   # (in, out, k)
    b_dc1 = jax.random.normal(ks[3], (32,), jnp.float32) * 0.02
    w_dc2 = jax.random.normal(ks[4], (32, 1, K), jnp.float32) * 0.05    # (in, out, k)
    b_dc2 = jax.random.normal(ks[5], (1,), jnp.float32) * 0.02
    return (w_fc, b_fc, w_dc1, b_dc1, w_dc2, b_dc2)


def prepare_params(params, output_length):
    """One-time (outside jit) layout / dtype preparation of the parameters."""
    w_fc, b_fc, w_dc1, b_dc1, w_dc2, b_dc2 = params
    latent = w_fc.shape[0]
    L2 = output_length // 2
    # fc weight: (latent, F) -> channel-major (64, latent, L2), bf16 (halves HBM)
    w_fc_cm = jnp.transpose(w_fc.reshape(latent, 64, L2), (1, 0, 2)).astype(jnp.bfloat16)
    b_fc_cm = b_fc.reshape(64, L2)[:, None, :]           # (64, 1, L2) f32
    # ConvTranspose1d(stride=1) == conv1d with (in<->out)-transposed, k-flipped w.
    w1t = jnp.transpose(w_dc1, (2, 1, 0))[::-1]          # (K, 32, 64); tap k -> offset k-PAD
    w2t = jnp.transpose(w_dc2, (2, 1, 0))[::-1]          # (K, 1, 32)
    # even/odd phase weights of the fused upsample+deconv2 (3 taps each)
    w_even = jnp.stack([w2t[0] + w2t[1], w2t[2] + w2t[3], w2t[4]], axis=0)  # (3,1,32)
    w_odd = jnp.stack([w2t[0], w2t[1] + w2t[2], w2t[3] + w2t[4]], axis=0)   # (3,1,32)
    w_eo = jnp.concatenate([w_even, w_odd], axis=1)                         # (3,2,32)
    return (w_fc_cm, b_fc_cm, w1t, b_dc1.reshape(32, 1), w_eo, b_dc2.reshape(1, 1))


# ----------------------------- pure-JAX reference ----------------------------

def reference_forward(x, params, output_length):
    w_fc, b_fc, w_dc1, b_dc1, w_dc2, b_dc2 = params
    B = x.shape[0]
    L2 = output_length // 2
    h = (x @ w_fc + b_fc).reshape(B, 64, L2)

    def conv_t_stride1(x_ncl, w_t, b, pad):
        w_conv = jnp.transpose(w_t, (1, 0, 2))[:, :, ::-1]   # (out, in, k)
        y = lax.conv_general_dilated(
            x_ncl, w_conv, window_strides=(1,), padding=[(pad, pad)],
            dimension_numbers=("NCH", "OIH", "NCH"))
        return y + b[None, :, None]

    y1 = jax.nn.relu(conv_t_stride1(h, w_dc1, b_dc1, PAD))
    u = jnp.repeat(y1, 2, axis=-1)
    y2 = conv_t_stride1(u, w_dc2, b_dc2, PAD)
    return jax.nn.sigmoid(y2)


# --------------------------------- main ---------------------------------------

if __name__ == "__main__":
    output_length = 256   # small stand-in for the default 7098 (must be even)
    latent_dim = 20
    B = 2

    key = jax.random.PRNGKey(0)
    k_x, k_p = jax.random.split(key)
    x = jax.random.normal(k_x, (B, latent_dim), jnp.float32)
    params = init_params(k_p, output_length, latent_dim)
    prep = prepare_params(params, output_length)   # one-time, outside jit

    fwd = jax.jit(gen_coder_decoder_forward, static_argnums=2)
    out = jax.block_until_ready(fwd(x, prep, output_length))

    ref = reference_forward(x, params, output_length)
    assert out.shape == (B, 1, output_length), out.shape
    # tolerance: fc weight/input are bf16 (f32 accumulation) and the sigmoid
    # epilogue uses the hardware approximate reciprocal.
    np.testing.assert_allclose(np.asarray(out), np.asarray(ref),
                               rtol=1e-2, atol=1e-2)
    print("KERNEL_OK")
</pallas_src>

<mosaic_0001>
module attributes {stable_mosaic.version = 11 : i64} {
  func.func @_fc_kernel(%arg0: i32, %arg1: memref<2x20xbf16, #tpu.memory_space<vmem>>, %arg2: memref<16x20x128xbf16, #tpu.memory_space<vmem>>, %arg3: memref<16x1x128xf32, #tpu.memory_space<vmem>>, %arg4: memref<2x16x128xf32, #tpu.memory_space<vmem>>) attributes {dimension_semantics = [#tpu.dimension_semantics<parallel>], iteration_bounds = array<i64: 4>, scalar_prefetch = 0 : i64, scratch_operands = 0 : i64, tpu.core_type = #tpu.core_type<tc>, window_params = [{pipeline_mode = #tpu.pipeline_mode<synchronous>, transform_indices = @transform_0, window_bounds = array<i64: 2, 20>}, {transform_indices = @transform_1, window_bounds = array<i64: 16, 20, 128>}, {transform_indices = @transform_2, window_bounds = array<i64: 16, 1, 128>}, {transform_indices = @transform_3, window_bounds = array<i64: 2, 16, 128>}]} {
    %c0 = arith.constant 0 : index
    %c0_0 = arith.constant 0 : index
    %0 = vector.load %arg1[%c0, %c0_0] : memref<2x20xbf16, #tpu.memory_space<vmem>>, vector<2x20xbf16>
    %c0_1 = arith.constant 0 : index
    %c0_2 = arith.constant 0 : index
    %c0_3 = arith.constant 0 : index
    %1 = vector.load %arg2[%c0_1, %c0_2, %c0_3] : memref<16x20x128xbf16, #tpu.memory_space<vmem>>, vector<1x20x128xbf16>
    %2 = vector.shape_cast %1 : vector<1x20x128xbf16> to vector<20x128xbf16>
    %cst = arith.constant dense<0.000000e+00> : vector<2x128xf32>
    %3 = tpu.matmul %0, %2, %cst {dimension_numbers = #tpu.dot_dimension_numbers<[1], [0], [0], [1], [0, 0, 1, 1], [], []>} : vector<2x20xbf16>, vector<20x128xbf16>, vector<2x128xf32> -> vector<2x128xf32>
    %c0_4 = arith.constant 0 : index
    %c0_5 = arith.constant 0 : index
    %c0_6 = arith.constant 0 : index
    %4 = vector.load %arg3[%c0_4, %c0_5, %c0_6] : memref<16x1x128xf32, #tpu.memory_space<vmem>>, vector<1x1x128xf32>
    %5 = vector.shape_cast %4 : vector<1x1x128xf32> to vector<1x128xf32>
    %6 = vector.broadcast %5 : vector<1x128xf32> to vector<2x128xf32>
    %7 = arith.addf %3, %6 : vector<2x128xf32>
    %c0_7 = arith.constant 0 : index
    %c0_8 = arith.constant 0 : index
    %c0_9 = arith.constant 0 : index
    %8 = vector.load %arg4[%c0_7, %c0_8, %c0_9] : memref<2x16x128xf32, #tpu.memory_space<vmem>>, vector<2x1x128xf32>
    %9 = vector.shape_cast %8 : vector<2x1x128xf32> to vector<2x128xf32>
    %10 = vector.shape_cast %7 : vector<2x128xf32> to vector<2x1x128xf32>
    tpu.vector_store %arg4[%c0_7, %c0_8, %c0_9], %10 {strides = array<i32>} : memref<2x16x128xf32, #tpu.memory_space<vmem>>, vector<2x1x128xf32>,
    %c1 = arith.constant 1 : index
    %c0_10 = arith.constant 0 : index
    %c0_11 = arith.constant 0 : index
    %11 = vector.load %arg2[%c1, %c0_10, %c0_11] : memref<16x20x128xbf16, #tpu.memory_space<vmem>>, vector<1x20x128xbf16>
    %12 = vector.shape_cast %11 : vector<1x20x128xbf16> to vector<20x128xbf16>
    %cst_12 = arith.constant dense<0.000000e+00> : vector<2x128xf32>
    %13 = tpu.matmul %0, %12, %cst_12 {dimension_numbers = #tpu.dot_dimension_numbers<[1], [0], [0], [1], [0, 0, 1, 1], [], []>} : vector<2x20xbf16>, vector<20x128xbf16>, vector<2x128xf32> -> vector<2x128xf32>
    %c1_13 = arith.constant 1 : index
    %c0_14 = arith.constant 0 : index
    %c0_15 = arith.constant 0 : index
    %14 = vector.load %arg3[%c1_13, %c0_14, %c0_15] : memref<16x1x128xf32, #tpu.memory_space<vmem>>, vector<1x1x128xf32>
    %15 = vector.shape_cast %14 : vector<1x1x128xf32> to vector<1x128xf32>
    %16 = vector.broadcast %15 : vector<1x128xf32> to vector<2x128xf32>
    %17 = arith.addf %13, %16 : vector<2x128xf32>
    %c0_16 = arith.constant 0 : index
    %c1_17 = arith.constant 1 : index
    %c0_18 = arith.constant 0 : index
    %18 = vector.load %arg4[%c0_16, %c1_17, %c0_18] : memref<2x16x128xf32, #tpu.memory_space<vmem>>, vector<2x1x128xf32>
    %19 = vector.shape_cast %18 : vector<2x1x128xf32> to vector<2x128xf32>
    %20 = vector.shape_cast %17 : vector<2x128xf32> to vector<2x1x128xf32>
    tpu.vector_store %arg4[%c0_16, %c1_17, %c0_18], %20 {strides = array<i32>} : memref<2x16x128xf32, #tpu.memory_space<vmem>>, vector<2x1x128xf32>,
    %c2 = arith.constant 2 : index
    %c0_19 = arith.constant 0 : index
    %c0_20 = arith.constant 0 : index
    %21 = vector.load %arg2[%c2, %c0_19, %c0_20] : memref<16x20x128xbf16, #tpu.memory_space<vmem>>, vector<1x20x128xbf16>
    %22 = vector.shape_cast %21 : vector<1x20x128xbf16> to vector<20x128xbf16>
    %cst_21 = arith.constant dense<0.000000e+00> : vector<2x128xf32>
    %23 = tpu.matmul %0, %22, %cst_21 {dimension_numbers = #tpu.dot_dimension_numbers<[1], [0], [0], [1], [0, 0, 1, 1], [], []>} : vector<2x20xbf16>, vector<20x128xbf16>, vector<2x128xf32> -> vector<2x128xf32>
    %c2_22 = arith.constant 2 : index
    %c0_23 = arith.constant 0 : index
    %c0_24 = arith.constant 0 : index
    %24 = vector.load %arg3[%c2_22, %c0_23, %c0_24] : memref<16x1x128xf32, #tpu.memory_space<vmem>>, vector<1x1x128xf32>
    %25 = vector.shape_cast %24 : vector<1x1x128xf32> to vector<1x128xf32>
    %26 = vector.broadcast %25 : vector<1x128xf32> to vector<2x128xf32>
    %27 = arith.addf %23, %26 : vector<2x128xf32>
    %c0_25 = arith.constant 0 : index
    %c2_26 = arith.constant 2 : index
    %c0_27 = arith.constant 0 : index
    %28 = vector.load %arg4[%c0_25, %c2_26, %c0_27] : memref<2x16x128xf32, #tpu.memory_space<vmem>>, vector<2x1x128xf32>
    %29 = vector.shape_cast %28 : vector<2x1x128xf32> to vector<2x128xf32>
    %30 = vector.shape_cast %27 : vector<2x128xf32> to vector<2x1x128xf32>
    tpu.vector_store %arg4[%c0_25, %c2_26, %c0_27], %30 {strides = array<i32>} : memref<2x16x128xf32, #tpu.memory_space<vmem>>, vector<2x1x128xf32>,
    %c3 = arith.constant 3 : index
    %c0_28 = arith.constant 0 : index
    %c0_29 = arith.constant 0 : index
    %31 = vector.load %arg2[%c3, %c0_28, %c0_29] : memref<16x20x128xbf16, #tpu.memory_space<vmem>>, vector<1x20x128xbf16>
    %32 = vector.shape_cast %31 : vector<1x20x128xbf16> to vector<20x128xbf16>
    %cst_30 = arith.constant dense<0.000000e+00> : vector<2x128xf32>
    %33 = tpu.matmul %0, %32, %cst_30 {dimension_numbers = #tpu.dot_dimension_numbers<[1], [0], [0], [1], [0, 0, 1, 1], [], []>} : vector<2x20xbf16>, vector<20x128xbf16>, vector<2x128xf32> -> vector<2x128xf32>
    %c3_31 = arith.constant 3 : index
    %c0_32 = arith.constant 0 : index
    %c0_33 = arith.constant 0 : index
    %34 = vector.load %arg3[%c3_31, %c0_32, %c0_33] : memref<16x1x128xf32, #tpu.memory_space<vmem>>, vector<1x1x128xf32>
    %35 = vector.shape_cast %34 : vector<1x1x128xf32> to vector<1x128xf32>
    %36 = vector.broadcast %35 : vector<1x128xf32> to vector<2x128xf32>
    %37 = arith.addf %33, %36 : vector<2x128xf32>
    %c0_34 = arith.constant 0 : index
    %c3_35 = arith.constant 3 : index
    %c0_36 = arith.constant 0 : index
    %38 = vector.load %arg4[%c0_34, %c3_35, %c0_36] : memref<2x16x128xf32, #tpu.memory_space<vmem>>, vector<2x1x128xf32>
    %39 = vector.shape_cast %38 : vector<2x1x128xf32> to vector<2x128xf32>
    %40 = vector.shape_cast %37 : vector<2x128xf32> to vector<2x1x128xf32>
    tpu.vector_store %arg4[%c0_34, %c3_35, %c0_36], %40 {strides = array<i32>} : memref<2x16x128xf32, #tpu.memory_space<vmem>>, vector<2x1x128xf32>,
    %c4 = arith.constant 4 : index
    %c0_37 = arith.constant 0 : index
    %c0_38 = arith.constant 0 : index
    %41 = vector.load %arg2[%c4, %c0_37, %c0_38] : memref<16x20x128xbf16, #tpu.memory_space<vmem>>, vector<1x20x128xbf16>
    %42 = vector.shape_cast %41 : vector<1x20x128xbf16> to vector<20x128xbf16>
    %cst_39 = arith.constant dense<0.000000e+00> : vector<2x128xf32>
    %43 = tpu.matmul %0, %42, %cst_39 {dimension_numbers = #tpu.dot_dimension_numbers<[1], [0], [0], [1], [0, 0, 1, 1], [], []>} : vector<2x20xbf16>, vector<20x128xbf16>, vector<2x128xf32> -> vector<2x128xf32>
    %c4_40 = arith.constant 4 : index
    %c0_41 = arith.constant 0 : index
    %c0_42 = arith.constant 0 : index
    %44 = vector.load %arg3[%c4_40, %c0_41, %c0_42] : memref<16x1x128xf32, #tpu.memory_space<vmem>>, vector<1x1x128xf32>
    %45 = vector.shape_cast %44 : vector<1x1x128xf32> to vector<1x128xf32>
    %46 = vector.broadcast %45 : vector<1x128xf32> to vector<2x128xf32>
    %47 = arith.addf %43, %46 : vector<2x128xf32>
    %c0_43 = arith.constant 0 : index
    %c4_44 = arith.constant 4 : index
    %c0_45 = arith.constant 0 : index
    %48 = vector.load %arg4[%c0_43, %c4_44, %c0_45] : memref<2x16x128xf32, #tpu.memory_space<vmem>>, vector<2x1x128xf32>
    %49 = vector.shape_cast %48 : vector<2x1x128xf32> to vector<2x128xf32>
    %50 = vector.shape_cast %47 : vector<2x128xf32> to vector<2x1x128xf32>
    tpu.vector_store %arg4[%c0_43, %c4_44, %c0_45], %50 {strides = array<i32>} : memref<2x16x128xf32, #tpu.memory_space<vmem>>, vector<2x1x128xf32>,
    %c5 = arith.constant 5 : index
    %c0_46 = arith.constant 0 : index
    %c0_47 = arith.constant 0 : index
    %51 = vector.load %arg2[%c5, %c0_46, %c0_47] : memref<16x20x128xbf16, #tpu.memory_space<vmem>>, vector<1x20x128xbf16>
    %52 = vector.shape_cast %51 : vector<1x20x128xbf16> to vector<20x128xbf16>
    %cst_48 = arith.constant dense<0.000000e+00> : vector<2x128xf32>
    %53 = tpu.matmul %0, %52, %cst_48 {dimension_numbers = #tpu.dot_dimension_numbers<[1], [0], [0], [1], [0, 0, 1, 1], [], []>} : vector<2x20xbf16>, vector<20x128xbf16>, vector<2x128xf32> -> vector<2x128xf32>
    %c5_49 = arith.constant 5 : index
    %c0_50 = arith.constant 0 : index
    %c0_51 = arith.constant 0 : index
    %54 = vector.load %arg3[%c5_49, %c0_50, %c0_51] : memref<16x1x128xf32, #tpu.memory_space<vmem>>, vector<1x1x128xf32>
    %55 = vector.shape_cast %54 : vector<1x1x128xf32> to vector<1x128xf32>
    %56 = vector.broadcast %55 : vector<1x128xf32> to vector<2x128xf32>
    %57 = arith.addf %53, %56 : vector<2x128xf32>
    %c0_52 = arith.constant 0 : index
    %c5_53 = arith.constant 5 : index
    %c0_54 = arith.constant 0 : index
    %58 = vector.load %arg4[%c0_52, %c5_53, %c0_54] : memref<2x16x128xf32, #tpu.memory_space<vmem>>, vector<2x1x128xf32>
    %59 = vector.shape_cast %58 : vector<2x1x128xf32> to vector<2x128xf32>
    %60 = vector.shape_cast %57 : vector<2x128xf32> to vector<2x1x128xf32>
    tpu.vector_store %arg4[%c0_52, %c5_53, %c0_54], %60 {strides = array<i32>} : memref<2x16x128xf32, #tpu.memory_space<vmem>>, vector<2x1x128xf32>,
    %c6 = arith.constant 6 : index
    %c0_55 = arith.constant 0 : index
    %c0_56 = arith.constant 0 : index
    %61 = vector.load %arg2[%c6, %c0_55, %c0_56] : memref<16x20x128xbf16, #tpu.memory_space<vmem>>, vector<1x20x128xbf16>
    %62 = vector.shape_cast %61 : vector<1x20x128xbf16> to vector<20x128xbf16>
    %cst_57 = arith.constant dense<0.000000e+00> : vector<2x128xf32>
    %63 = tpu.matmul %0, %62, %cst_57 {dimension_numbers = #tpu.dot_dimension_numbers<[1], [0], [0], [1], [0, 0, 1, 1], [], []>} : vector<2x20xbf16>, vector<20x128xbf16>, vector<2x128xf32> -> vector<2x128xf32>
    %c6_58 = arith.constant 6 : index
    %c0_59 = arith.constant 0 : index
    %c0_60 = arith.constant 0 : index
    %64 = vector.load %arg3[%c6_58, %c0_59, %c0_60] : memref<16x1x128xf32, #tpu.memory_space<vmem>>, vector<1x1x128xf32>
    %65 = vector.shape_cast %64 : vector<1x1x128xf32> to vector<1x128xf32>
    %66 = vector.broadcast %65 : vector<1x128xf32> to vector<2x128xf32>
    %67 = arith.addf %63, %66 : vector<2x128xf32>
    %c0_61 = arith.constant 0 : index
    %c6_62 = arith.constant 6 : index
    %c0_63 = arith.constant 0 : index
    %68 = vector.load %arg4[%c0_61, %c6_62, %c0_63] : memref<2x16x128xf32, #tpu.memory_space<vmem>>, vector<2x1x128xf32>
    %69 = vector.shape_cast %68 : vector<2x1x128xf32> to vector<2x128xf32>
    %70 = vector.shape_cast %67 : vector<2x128xf32> to vector<2x1x128xf32>
    tpu.vector_store %arg4[%c0_61, %c6_62, %c0_63], %70 {strides = array<i32>} : memref<2x16x128xf32, #tpu.memory_space<vmem>>, vector<2x1x128xf32>,
    %c7 = arith.constant 7 : index
    %c0_64 = arith.constant 0 : index
    %c0_65 = arith.constant 0 : index
    %71 = vector.load %arg2[%c7, %c0_64, %c0_65] : memref<16x20x128xbf16, #tpu.memory_space<vmem>>, vector<1x20x128xbf16>
    %72 = vector.shape_cast %71 : vector<1x20x128xbf16> to vector<20x128xbf16>
    %cst_66 = arith.constant dense<0.000000e+00> : vector<2x128xf32>
    %73 = tpu.matmul %0, %72, %cst_66 {dimension_numbers = #tpu.dot_dimension_numbers<[1], [0], [0], [1], [0, 0, 1, 1], [], []>} : vector<2x20xbf16>, vector<20x128xbf16>, vector<2x128xf32> -> vector<2x128xf32>
    %c7_67 = arith.constant 7 : index
    %c0_68 = arith.constant 0 : index
    %c0_69 = arith.constant 0 : index
    %74 = vector.load %arg3[%c7_67, %c0_68, %c0_69] : memref<16x1x128xf32, #tpu.memory_space<vmem>>, vector<1x1x128xf32>
    %75 = vector.shape_cast %74 : vector<1x1x128xf32> to vector<1x128xf32>
    %76 = vector.broadcast %75 : vector<1x128xf32> to vector<2x128xf32>
    %77 = arith.addf %73, %76 : vector<2x128xf32>
    %c0_70 = arith.constant 0 : index
    %c7_71 = arith.constant 7 : index
    %c0_72 = arith.constant 0 : index
    %78 = vector.load %arg4[%c0_70, %c7_71, %c0_72] : memref<2x16x128xf32, #tpu.memory_space<vmem>>, vector<2x1x128xf32>
    %79 = vector.shape_cast %78 : vector<2x1x128xf32> to vector<2x128xf32>
    %80 = vector.shape_cast %77 : vector<2x128xf32> to vector<2x1x128xf32>
    tpu.vector_store %arg4[%c0_70, %c7_71, %c0_72], %80 {strides = array<i32>} : memref<2x16x128xf32, #tpu.memory_space<vmem>>, vector<2x1x128xf32>,
    %c8 = arith.constant 8 : index
    %c0_73 = arith.constant 0 : index
    %c0_74 = arith.constant 0 : index
    %81 = vector.load %arg2[%c8, %c0_73, %c0_74] : memref<16x20x128xbf16, #tpu.memory_space<vmem>>, vector<1x20x128xbf16>
    %82 = vector.shape_cast %81 : vector<1x20x128xbf16> to vector<20x128xbf16>
    %cst_75 = arith.constant dense<0.000000e+00> : vector<2x128xf32>
    %83 = tpu.matmul %0, %82, %cst_75 {dimension_numbers = #tpu.dot_dimension_numbers<[1], [0], [0], [1], [0, 0, 1, 1], [], []>} : vector<2x20xbf16>, vector<20x128xbf16>, vector<2x128xf32> -> vector<2x128xf32>
    %c8_76 = arith.constant 8 : index
    %c0_77 = arith.constant 0 : index
    %c0_78 = arith.constant 0 : index
    %84 = vector.load %arg3[%c8_76, %c0_77, %c0_78] : memref<16x1x128xf32, #tpu.memory_space<vmem>>, vector<1x1x128xf32>
    %85 = vector.shape_cast %84 : vector<1x1x128xf32> to vector<1x128xf32>
    %86 = vector.broadcast %85 : vector<1x128xf32> to vector<2x128xf32>
    %87 = arith.addf %83, %86 : vector<2x128xf32>
    %c0_79 = arith.constant 0 : index
    %c8_80 = arith.constant 8 : index
    %c0_81 = arith.constant 0 : index
    %88 = vector.load %arg4[%c0_79, %c8_80, %c0_81] : memref<2x16x128xf32, #tpu.memory_space<vmem>>, vector<2x1x128xf32>
    %89 = vector.shape_cast %88 : vector<2x1x128xf32> to vector<2x128xf32>
    %90 = vector.shape_cast %87 : vector<2x128xf32> to vector<2x1x128xf32>
    tpu.vector_store %arg4[%c0_79, %c8_80, %c0_81], %90 {strides = array<i32>} : memref<2x16x128xf32, #tpu.memory_space<vmem>>, vector<2x1x128xf32>,
    %c9 = arith.constant 9 : index
    %c0_82 = arith.constant 0 : index
    %c0_83 = arith.constant 0 : index
    %91 = vector.load %arg2[%c9, %c0_82, %c0_83] : memref<16x20x128xbf16, #tpu.memory_space<vmem>>, vector<1x20x128xbf16>
    %92 = vector.shape_cast %91 : vector<1x20x128xbf16> to vector<20x128xbf16>
    %cst_84 = arith.constant dense<0.000000e+00> : vector<2x128xf32>
    %93 = tpu.matmul %0, %92, %cst_84 {dimension_numbers = #tpu.dot_dimension_numbers<[1], [0], [0], [1], [0, 0, 1, 1], [], []>} : vector<2x20xbf16>, vector<20x128xbf16>, vector<2x128xf32> -> vector<2x128xf32>
    %c9_85 = arith.constant 9 : index
    %c0_86 = arith.constant 0 : index
    %c0_87 = arith.constant 0 : index
    %94 = vector.load %arg3[%c9_85, %c0_86, %c0_87] : memref<16x1x128xf32, #tpu.memory_space<vmem>>, vector<1x1x128xf32>
    %95 = vector.shape_cast %94 : vector<1x1x128xf32> to vector<1x128xf32>
    %96 = vector.broadcast %95 : vector<1x128xf32> to vector<2x128xf32>
    %97 = arith.addf %93, %96 : vector<2x128xf32>
    %c0_88 = arith.constant 0 : index
    %c9_89 = arith.constant 9 : index
    %c0_90 = arith.constant 0 : index
    %98 = vector.load %arg4[%c0_88, %c9_89, %c0_90] : memref<2x16x128xf32, #tpu.memory_space<vmem>>, vector<2x1x128xf32>
    %99 = vector.shape_cast %98 : vector<2x1x128xf32> to vector<2x128xf32>
    %100 = vector.shape_cast %97 : vector<2x128xf32> to vector<2x1x128xf32>
    tpu.vector_store %arg4[%c0_88, %c9_89, %c0_90], %100 {strides = array<i32>} : memref<2x16x128xf32, #tpu.memory_space<vmem>>, vector<2x1x128xf32>,
    %c10 = arith.constant 10 : index
    %c0_91 = arith.constant 0 : index
    %c0_92 = arith.constant 0 : index
    %101 = vector.load %arg2[%c10, %c0_91, %c0_92] : memref<16x20x128xbf16, #tpu.memory_space<vmem>>, vector<1x20x128xbf16>
    %102 = vector.shape_cast %101 : vector<1x20x128xbf16> to vector<20x128xbf16>
    %cst_93 = arith.constant dense<0.000000e+00> : vector<2x128xf32>
    %103 = tpu.matmul %0, %102, %cst_93 {dimension_numbers = #tpu.dot_dimension_numbers<[1], [0], [0], [1], [0, 0, 1, 1], [], []>} : vector<2x20xbf16>, vector<20x128xbf16>, vector<2x128xf32> -> vector<2x128xf32>
    %c10_94 = arith.constant 10 : index
    %c0_95 = arith.constant 0 : index
    %c0_96 = arith.constant 0 : index
    %104 = vector.load %arg3[%c10_94, %c0_95, %c0_96] : memref<16x1x128xf32, #tpu.memory_space<vmem>>, vector<1x1x128xf32>
    %105 = vector.shape_cast %104 : vector<1x1x128xf32> to vector<1x128xf32>
    %106 = vector.broadcast %105 : vector<1x128xf32> to vector<2x128xf32>
    %107 = arith.addf %103, %106 : vector<2x128xf32>
    %c0_97 = arith.constant 0 : index
    %c10_98 = arith.constant 10 : index
    %c0_99 = arith.constant 0 : index
    %108 = vector.load %arg4[%c0_97, %c10_98, %c0_99] : memref<2x16x128xf32, #tpu.memory_space<vmem>>, vector<2x1x128xf32>
    %109 = vector.shape_cast %108 : vector<2x1x128xf32> to vector<2x128xf32>
    %110 = vector.shape_cast %107 : vector<2x128xf32> to vector<2x1x128xf32>
    tpu.vector_store %arg4[%c0_97, %c10_98, %c0_99], %110 {strides = array<i32>} : memref<2x16x128xf32, #tpu.memory_space<vmem>>, vector<2x1x128xf32>,
    %c11 = arith.constant 11 : index
    %c0_100 = arith.constant 0 : index
    %c0_101 = arith.constant 0 : index
    %111 = vector.load %arg2[%c11, %c0_100, %c0_101] : memref<16x20x128xbf16, #tpu.memory_space<vmem>>, vector<1x20x128xbf16>
    %112 = vector.shape_cast %111 : vector<1x20x128xbf16> to vector<20x128xbf16>
    %cst_102 = arith.constant dense<0.000000e+00> : vector<2x128xf32>
    %113 = tpu.matmul %0, %112, %cst_102 {dimension_numbers = #tpu.dot_dimension_numbers<[1], [0], [0], [1], [0, 0, 1, 1], [], []>} : vector<2x20xbf16>, vector<20x128xbf16>, vector<2x128xf32> -> vector<2x128xf32>
    %c11_103 = arith.constant 11 : index
    %c0_104 = arith.constant 0 : index
    %c0_105 = arith.constant 0 : index
    %114 = vector.load %arg3[%c11_103, %c0_104, %c0_105] : memref<16x1x128xf32, #tpu.memory_space<vmem>>, vector<1x1x128xf32>
    %115 = vector.shape_cast %114 : vector<1x1x128xf32> to vector<1x128xf32>
    %116 = vector.broadcast %115 : vector<1x128xf32> to vector<2x128xf32>
    %117 = arith.addf %113, %116 : vector<2x128xf32>
    %c0_106 = arith.constant 0 : index
    %c11_107 = arith.constant 11 : index
    %c0_108 = arith.constant 0 : index
    %118 = vector.load %arg4[%c0_106, %c11_107, %c0_108] : memref<2x16x128xf32, #tpu.memory_space<vmem>>, vector<2x1x128xf32>
    %119 = vector.shape_cast %118 : vector<2x1x128xf32> to vector<2x128xf32>
    %120 = vector.shape_cast %117 : vector<2x128xf32> to vector<2x1x128xf32>
    tpu.vector_store %arg4[%c0_106, %c11_107, %c0_108], %120 {strides = array<i32>} : memref<2x16x128xf32, #tpu.memory_space<vmem>>, vector<2x1x128xf32>,
    %c12 = arith.constant 12 : index
    %c0_109 = arith.constant 0 : index
    %c0_110 = arith.constant 0 : index
    %121 = vector.load %arg2[%c12, %c0_109, %c0_110] : memref<16x20x128xbf16, #tpu.memory_space<vmem>>, vector<1x20x128xbf16>
    %122 = vector.shape_cast %121 : vector<1x20x128xbf16> to vector<20x128xbf16>
    %cst_111 = arith.constant dense<0.000000e+00> : vector<2x128xf32>
    %123 = tpu.matmul %0, %122, %cst_111 {dimension_numbers = #tpu.dot_dimension_numbers<[1], [0], [0], [1], [0, 0, 1, 1], [], []>} : vector<2x20xbf16>, vector<20x128xbf16>, vector<2x128xf32> -> vector<2x128xf32>
    %c12_112 = arith.constant 12 : index
    %c0_113 = arith.constant 0 : index
    %c0_114 = arith.constant 0 : index
    %124 = vector.load %arg3[%c12_112, %c0_113, %c0_114] : memref<16x1x128xf32, #tpu.memory_space<vmem>>, vector<1x1x128xf32>
    %125 = vector.shape_cast %124 : vector<1x1x128xf32> to vector<1x128xf32>
    %126 = vector.broadcast %125 : vector<1x128xf32> to vector<2x128xf32>
    %127 = arith.addf %123, %126 : vector<2x128xf32>
    %c0_115 = arith.constant 0 : index
    %c12_116 = arith.constant 12 : index
    %c0_117 = arith.constant 0 : index
    %128 = vector.load %arg4[%c0_115, %c12_116, %c0_117] : memref<2x16x128xf32, #tpu.memory_space<vmem>>, vector<2x1x128xf32>
    %129 = vector.shape_cast %128 : vector<2x1x128xf32> to vector<2x128xf32>
    %130 = vector.shape_cast %127 : vector<2x128xf32> to vector<2x1x128xf32>
    tpu.vector_store %arg4[%c0_115, %c12_116, %c0_117], %130 {strides = array<i32>} : memref<2x16x128xf32, #tpu.memory_space<vmem>>, vector<2x1x128xf32>,
    %c13 = arith.constant 13 : index
    %c0_118 = arith.constant 0 : index
    %c0_119 = arith.constant 0 : index
    %131 = vector.load %arg2[%c13, %c0_118, %c0_119] : memref<16x20x128xbf16, #tpu.memory_space<vmem>>, vector<1x20x128xbf16>
    %132 = vector.shape_cast %131 : vector<1x20x128xbf16> to vector<20x128xbf16>
    %cst_120 = arith.constant dense<0.000000e+00> : vector<2x128xf32>
    %133 = tpu.matmul %0, %132, %cst_120 {dimension_numbers = #tpu.dot_dimension_numbers<[1], [0], [0], [1], [0, 0, 1, 1], [], []>} : vector<2x20xbf16>, vector<20x128xbf16>, vector<2x128xf32> -> vector<2x128xf32>
    %c13_121 = arith.constant 13 : index
    %c0_122 = arith.constant 0 : index
    %c0_123 = arith.constant 0 : index
    %134 = vector.load %arg3[%c13_121, %c0_122, %c0_123] : memref<16x1x128xf32, #tpu.memory_space<vmem>>, vector<1x1x128xf32>
    %135 = vector.shape_cast %134 : vector<1x1x128xf32> to vector<1x128xf32>
    %136 = vector.broadcast %135 : vector<1x128xf32> to vector<2x128xf32>
    %137 = arith.addf %133, %136 : vector<2x128xf32>
    %c0_124 = arith.constant 0 : index
    %c13_125 = arith.constant 13 : index
    %c0_126 = arith.constant 0 : index
    %138 = vector.load %arg4[%c0_124, %c13_125, %c0_126] : memref<2x16x128xf32, #tpu.memory_space<vmem>>, vector<2x1x128xf32>
    %139 = vector.shape_cast %138 : vector<2x1x128xf32> to vector<2x128xf32>
    %140 = vector.shape_cast %137 : vector<2x128xf32> to vector<2x1x128xf32>
    tpu.vector_store %arg4[%c0_124, %c13_125, %c0_126], %140 {strides = array<i32>} : memref<2x16x128xf32, #tpu.memory_space<vmem>>, vector<2x1x128xf32>,
    %c14 = arith.constant 14 : index
    %c0_127 = arith.constant 0 : index
    %c0_128 = arith.constant 0 : index
    %141 = vector.load %arg2[%c14, %c0_127, %c0_128] : memref<16x20x128xbf16, #tpu.memory_space<vmem>>, vector<1x20x128xbf16>
    %142 = vector.shape_cast %141 : vector<1x20x128xbf16> to vector<20x128xbf16>
    %cst_129 = arith.constant dense<0.000000e+00> : vector<2x128xf32>
    %143 = tpu.matmul %0, %142, %cst_129 {dimension_numbers = #tpu.dot_dimension_numbers<[1], [0], [0], [1], [0, 0, 1, 1], [], []>} : vector<2x20xbf16>, vector<20x128xbf16>, vector<2x128xf32> -> vector<2x128xf32>
    %c14_130 = arith.constant 14 : index
    %c0_131 = arith.constant 0 : index
    %c0_132 = arith.constant 0 : index
    %144 = vector.load %arg3[%c14_130, %c0_131, %c0_132] : memref<16x1x128xf32, #tpu.memory_space<vmem>>, vector<1x1x128xf32>
    %145 = vector.shape_cast %144 : vector<1x1x128xf32> to vector<1x128xf32>
    %146 = vector.broadcast %145 : vector<1x128xf32> to vector<2x128xf32>
    %147 = arith.addf %143, %146 : vector<2x128xf32>
    %c0_133 = arith.constant 0 : index
    %c14_134 = arith.constant 14 : index
    %c0_135 = arith.constant 0 : index
    %148 = vector.load %arg4[%c0_133, %c14_134, %c0_135] : memref<2x16x128xf32, #tpu.memory_space<vmem>>, vector<2x1x128xf32>
    %149 = vector.shape_cast %148 : vector<2x1x128xf32> to vector<2x128xf32>
    %150 = vector.shape_cast %147 : vector<2x128xf32> to vector<2x1x128xf32>
    tpu.vector_store %arg4[%c0_133, %c14_134, %c0_135], %150 {strides = array<i32>} : memref<2x16x128xf32, #tpu.memory_space<vmem>>, vector<2x1x128xf32>,
    %c15 = arith.constant 15 : index
    %c0_136 = arith.constant 0 : index
    %c0_137 = arith.constant 0 : index
    %151 = vector.load %arg2[%c15, %c0_136, %c0_137] : memref<16x20x128xbf16, #tpu.memory_space<vmem>>, vector<1x20x128xbf16>
    %152 = vector.shape_cast %151 : vector<1x20x128xbf16> to vector<20x128xbf16>
    %cst_138 = arith.constant dense<0.000000e+00> : vector<2x128xf32>
    %153 = tpu.matmul %0, %152, %cst_138 {dimension_numbers = #tpu.dot_dimension_numbers<[1], [0], [0], [1], [0, 0, 1, 1], [], []>} : vector<2x20xbf16>, vector<20x128xbf16>, vector<2x128xf32> -> vector<2x128xf32>
    %c15_139 = arith.constant 15 : index
    %c0_140 = arith.constant 0 : index
    %c0_141 = arith.constant 0 : index
    %154 = vector.load %arg3[%c15_139, %c0_140, %c0_141] : memref<16x1x128xf32, #tpu.memory_space<vmem>>, vector<1x1x128xf32>
    %155 = vector.shape_cast %154 : vector<1x1x128xf32> to vector<1x128xf32>
    %156 = vector.broadcast %155 : vector<1x128xf32> to vector<2x128xf32>
    %157 = arith.addf %153, %156 : vector<2x128xf32>
    %c0_142 = arith.constant 0 : index
    %c15_143 = arith.constant 15 : index
    %c0_144 = arith.constant 0 : index
    %158 = vector.load %arg4[%c0_142, %c15_143, %c0_144] : memref<2x16x128xf32, #tpu.memory_space<vmem>>, vector<2x1x128xf32>
    %159 = vector.shape_cast %158 : vector<2x1x128xf32> to vector<2x128xf32>
    %160 = vector.shape_cast %157 : vector<2x128xf32> to vector<2x1x128xf32>
    tpu.vector_store %arg4[%c0_142, %c15_143, %c0_144], %160 {strides = array<i32>} : memref<2x16x128xf32, #tpu.memory_space<vmem>>, vector<2x1x128xf32>,
    return
  }
  func.func @transform_0(%arg0: i32) -> (i32, i32) {
    %c0_i32 = arith.constant 0 : i32
    %c0_i32_0 = arith.constant 0 : i32
    %c0_i32_1 = arith.constant 0 : i32
    return %c0_i32, %c0_i32_0 : i32, i32
  }
  func.func @transform_1(%arg0: i32) -> (i32, i32, i32) {
    %c0_i32 = arith.constant 0 : i32
    %c0_i32_0 = arith.constant 0 : i32
    %c0_i32_1 = arith.constant 0 : i32
    return %arg0, %c0_i32, %c0_i32_0 : i32, i32, i32
  }
  func.func @transform_2(%arg0: i32) -> (i32, i32, i32) {
    %c0_i32 = arith.constant 0 : i32
    %c0_i32_0 = arith.constant 0 : i32
    %c0_i32_1 = arith.constant 0 : i32
    return %arg0, %c0_i32, %c0_i32_0 : i32, i32, i32
  }
  func.func @transform_3(%arg0: i32) -> (i32, i32, i32) {
    %c0_i32 = arith.constant 0 : i32
    %c0_i32_0 = arith.constant 0 : i32
    %c0_i32_1 = arith.constant 0 : i32
    return %c0_i32, %arg0, %c0_i32_0 : i32, i32, i32
  }
}

module attributes {stable_mosaic.version = 11 : i64} {
  func.func @_deconv_up_sig_kernel(%arg0: i32, %arg1: memref<1x64x128xf32, #tpu.memory_space<vmem>>, %arg2: memref<5x32x64xf32, #tpu.memory_space<vmem>>, %arg3: memref<32x1xf32, #tpu.memory_space<vmem>>, %arg4: memref<3x2x32xf32, #tpu.memory_space<vmem>>, %arg5: memref<1x1xf32, #tpu.memory_space<vmem>>, %arg6: memref<1x2x128xf32, #tpu.memory_space<vmem>>, %arg7: memref<32x128xf32, #tpu.memory_space<vmem>>) attributes {dimension_semantics = [#tpu.dimension_semantics<parallel>], iteration_bounds = array<i64: 2>, scalar_prefetch = 0 : i64, scratch_operands = 1 : i64, tpu.core_type = #tpu.core_type<tc>, window_params = [{transform_indices = @transform_0, window_bounds = array<i64: 1, 64, 128>}, {pipeline_mode = #tpu.pipeline_mode<synchronous>, transform_indices = @transform_1, window_bounds = array<i64: 5, 32, 64>}, {pipeline_mode = #tpu.pipeline_mode<synchronous>, transform_indices = @transform_2, window_bounds = array<i64: 32, 1>}, {pipeline_mode = #tpu.pipeline_mode<synchronous>, transform_indices = @transform_3, window_bounds = array<i64: 3, 2, 32>}, {pipeline_mode = #tpu.pipeline_mode<synchronous>, transform_indices = @transform_4, window_bounds = array<i64: 1, 1>}, {transform_indices = @transform_5, window_bounds = array<i64: 1, 2, 128>}]} {
    %c0 = arith.constant 0 : index
    %c0_0 = arith.constant 0 : index
    %c0_1 = arith.constant 0 : index
    %0 = vector.load %arg1[%c0, %c0_0, %c0_1] : memref<1x64x128xf32, #tpu.memory_space<vmem>>, vector<1x64x128xf32>
    %1 = vector.shape_cast %0 : vector<1x64x128xf32> to vector<64x128xf32>
    %c2 = arith.constant 2 : index
    %c0_2 = arith.constant 0 : index
    %c0_3 = arith.constant 0 : index
    %2 = vector.load %arg2[%c2, %c0_2, %c0_3] : memref<5x32x64xf32, #tpu.memory_space<vmem>>, vector<1x32x64xf32>
    %3 = vector.shape_cast %2 : vector<1x32x64xf32> to vector<32x64xf32>
    %cst = arith.constant dense<0.000000e+00> : vector<32x128xf32>
    %4 = tpu.matmul %3, %1, %cst {dimension_numbers = #tpu.dot_dimension_numbers<[1], [0], [0], [1], [0, 0, 1, 1], [], []>} : vector<32x64xf32>, vector<64x128xf32>, vector<32x128xf32> -> vector<32x128xf32>
    %c0_4 = arith.constant 0 : index
    %c0_5 = arith.constant 0 : index
    %c0_6 = arith.constant 0 : index
    %5 = vector.load %arg2[%c0_4, %c0_5, %c0_6] : memref<5x32x64xf32, #tpu.memory_space<vmem>>, vector<1x32x64xf32>
    %6 = vector.shape_cast %5 : vector<1x32x64xf32> to vector<32x64xf32>
    %cst_7 = arith.constant dense<0.000000e+00> : vector<32x128xf32>
    %7 = tpu.matmul %6, %1, %cst_7 {dimension_numbers = #tpu.dot_dimension_numbers<[1], [0], [0], [1], [0, 0, 1, 1], [], []>} : vector<32x64xf32>, vector<64x128xf32>, vector<32x128xf32> -> vector<32x128xf32>
    %c2_i32 = arith.constant 2 : i32
    %8 = tpu.dynamic_rotate %7 by %c2_i32 dim 1 : vector<32x128xf32>, i32 -> vector<32x128xf32>
    %9 = arith.addf %4, %8 : vector<32x128xf32>
    %c1 = arith.constant 1 : index
    %c0_8 = arith.constant 0 : index
    %c0_9 = arith.constant 0 : index
    %10 = vector.load %arg2[%c1, %c0_8, %c0_9] : memref<5x32x64xf32, #tpu.memory_space<vmem>>, vector<1x32x64xf32>
    %11 = vector.shape_cast %10 : vector<1x32x64xf32> to vector<32x64xf32>
    %cst_10 = arith.constant dense<0.000000e+00> : vector<32x128xf32>
    %12 = tpu.matmul %11, %1, %cst_10 {dimension_numbers = #tpu.dot_dimension_numbers<[1], [0], [0], [1], [0, 0, 1, 1], [], []>} : vector<32x64xf32>, vector<64x128xf32>, vector<32x128xf32> -> vector<32x128xf32>
    %c1_i32 = arith.constant 1 : i32
    %13 = tpu.dynamic_rotate %12 by %c1_i32 dim 1 : vector<32x128xf32>, i32 -> vector<32x128xf32>
    %14 = arith.addf %9, %13 : vector<32x128xf32>
    %c3 = arith.constant 3 : index
    %c0_11 = arith.constant 0 : index
    %c0_12 = arith.constant 0 : index
    %15 = vector.load %arg2[%c3, %c0_11, %c0_12] : memref<5x32x64xf32, #tpu.memory_space<vmem>>, vector<1x32x64xf32>
    %16 = vector.shape_cast %15 : vector<1x32x64xf32> to vector<32x64xf32>
    %cst_13 = arith.constant dense<0.000000e+00> : vector<32x128xf32>
    %17 = tpu.matmul %16, %1, %cst_13 {dimension_numbers = #tpu.dot_dimension_numbers<[1], [0], [0], [1], [0, 0, 1, 1], [], []>} : vector<32x64xf32>, vector<64x128xf32>, vector<32x128xf32> -> vector<32x128xf32>
    %c127_i32 = arith.constant 127 : i32
    %18 = tpu.dynamic_rotate %17 by %c127_i32 dim 1 : vector<32x128xf32>, i32 -> vector<32x128xf32>
    %19 = arith.addf %14, %18 : vector<32x128xf32>
    %c4 = arith.constant 4 : index
    %c0_14 = arith.constant 0 : index
    %c0_15 = arith.constant 0 : index
    %20 = vector.load %arg2[%c4, %c0_14, %c0_15] : memref<5x32x64xf32, #tpu.memory_space<vmem>>, vector<1x32x64xf32>
    %21 = vector.shape_cast %20 : vector<1x32x64xf32> to vector<32x64xf32>
    %cst_16 = arith.constant dense<0.000000e+00> : vector<32x128xf32>
    %22 = tpu.matmul %21, %1, %cst_16 {dimension_numbers = #tpu.dot_dimension_numbers<[1], [0], [0], [1], [0, 0, 1, 1], [], []>} : vector<32x64xf32>, vector<64x128xf32>, vector<32x128xf32> -> vector<32x128xf32>
    %c126_i32 = arith.constant 126 : i32
    %23 = tpu.dynamic_rotate %22 by %c126_i32 dim 1 : vector<32x128xf32>, i32 -> vector<32x128xf32>
    %24 = arith.addf %19, %23 : vector<32x128xf32>
    %c0_17 = arith.constant 0 : index
    %c0_18 = arith.constant 0 : index
    %25 = vector.load %arg3[%c0_17, %c0_18] : memref<32x1xf32, #tpu.memory_space<vmem>>, vector<32x1xf32>
    %26 = vector.broadcast %25 : vector<32x1xf32> to vector<32x128xf32>
    %27 = arith.addf %24, %26 : vector<32x128xf32>
    %cst_19 = arith.constant 0.000000e+00 : f32
    %28 = vector.broadcast %cst_19 : f32 to vector<32x128xf32>
    %29 = arith.maximumf %27, %28 : vector<32x128xf32>
    %c0_20 = arith.constant 0 : index
    %c0_21 = arith.constant 0 : index
    %30 = vector.load %arg7[%c0_20, %c0_21] : memref<32x128xf32, #tpu.memory_space<vmem>>, vector<32x128xf32>
    tpu.vector_store %arg7[%c0_20, %c0_21], %29 {strides = array<i32>} : memref<32x128xf32, #tpu.memory_space<vmem>>, vector<32x128xf32>,
    %c2_22 = arith.constant 2 : index
    %c0_23 = arith.constant 0 : index
    %c0_24 = arith.constant 0 : index
    %31 = vector.load %arg2[%c2_22, %c0_23, %c0_24] : memref<5x32x64xf32, #tpu.memory_space<vmem>>, vector<1x32x64xf32>
    %32 = vector.shape_cast %31 : vector<1x32x64xf32> to vector<32x64xf32>
    %33 = vector.extract_strided_slice %1 {offsets = [0, 0], sizes = [64, 1], strides = [1, 1]} : vector<64x128xf32> to vector<64x1xf32>
    %cst_25 = arith.constant dense<0.000000e+00> : vector<32x1xf32>
    %34 = tpu.matmul %32, %33, %cst_25 {dimension_numbers = #tpu.dot_dimension_numbers<[1], [0], [0], [1], [0, 0, 1, 1], [], []>} : vector<32x64xf32>, vector<64x1xf32>, vector<32x1xf32> -> vector<32x1xf32>
    %c3_26 = arith.constant 3 : index
    %c0_27 = arith.constant 0 : index
    %c0_28 = arith.constant 0 : index
    %35 = vector.load %arg2[%c3_26, %c0_27, %c0_28] : memref<5x32x64xf32, #tpu.memory_space<vmem>>, vector<1x32x64xf32>
    %36 = vector.shape_cast %35 : vector<1x32x64xf32> to vector<32x64xf32>
    %37 = vector.extract_strided_slice %1 {offsets = [0, 1], sizes = [64, 1], strides = [1, 1]} : vector<64x128xf32> to vector<64x1xf32>
    %cst_29 = arith.constant dense<0.000000e+00> : vector<32x1xf32>
    %38 = tpu.matmul %36, %37, %cst_29 {dimension_numbers = #tpu.dot_dimension_numbers<[1], [0], [0], [1], [0, 0, 1, 1], [], []>} : vector<32x64xf32>, vector<64x1xf32>, vector<32x1xf32> -> vector<32x1xf32>
    %39 = arith.addf %34, %38 : vector<32x1xf32>
    %c4_30 = arith.constant 4 : index
    %c0_31 = arith.constant 0 : index
    %c0_32 = arith.constant 0 : index
    %40 = vector.load %arg2[%c4_30, %c0_31, %c0_32] : memref<5x32x64xf32, #tpu.memory_space<vmem>>, vector<1x32x64xf32>
    %41 = vector.shape_cast %40 : vector<1x32x64xf32> to vector<32x64xf32>
    %42 = vector.extract_strided_slice %1 {offsets = [0, 2], sizes = [64, 1], strides = [1, 1]} : vector<64x128xf32> to vector<64x1xf32>
    %cst_33 = arith.constant dense<0.000000e+00> : vector<32x1xf32>
    %43 = tpu.matmul %41, %42, %cst_33 {dimension_numbers = #tpu.dot_dimension_numbers<[1], [0], [0], [1], [0, 0, 1, 1], [], []>} : vector<32x64xf32>, vector<64x1xf32>, vector<32x1xf32> -> vector<32x1xf32>
    %44 = arith.addf %39, %43 : vector<32x1xf32>
    %c0_34 = arith.constant 0 : index
    %c0_35 = arith.constant 0 : index
    %45 = vector.load %arg3[%c0_34, %c0_35] : memref<32x1xf32, #tpu.memory_space<vmem>>, vector<32x1xf32>
    %46 = arith.addf %44, %45 : vector<32x1xf32>
    %cst_36 = arith.constant 0.000000e+00 : f32
    %47 = vector.broadcast %cst_36 : f32 to vector<32x1xf32>
    %48 = arith.maximumf %46, %47 : vector<32x1xf32>
    %c0_37 = arith.constant 0 : index
    %c0_38 = arith.constant 0 : index
    %49 = vector.load %arg7[%c0_37, %c0_38] : memref<32x128xf32, #tpu.memory_space<vmem>>, vector<32x1xf32>
    tpu.vector_store %arg7[%c0_37, %c0_38], %48 {strides = array<i32>} : memref<32x128xf32, #tpu.memory_space<vmem>>, vector<32x1xf32>,
    %c1_39 = arith.constant 1 : index
    %c0_40 = arith.constant 0 : index
    %c0_41 = arith.constant 0 : index
    %50 = vector.load %arg2[%c1_39, %c0_40, %c0_41] : memref<5x32x64xf32, #tpu.memory_space<vmem>>, vector<1x32x64xf32>
    %51 = vector.shape_cast %50 : vector<1x32x64xf32> to vector<32x64xf32>
    %52 = vector.extract_strided_slice %1 {offsets = [0, 0], sizes = [64, 1], strides = [1, 1]} : vector<64x128xf32> to vector<64x1xf32>
    %cst_42 = arith.constant dense<0.000000e+00> : vector<32x1xf32>
    %53 = tpu.matmul %51, %52, %cst_42 {dimension_numbers = #tpu.dot_dimension_numbers<[1], [0], [0], [1], [0, 0, 1, 1], [], []>} : vector<32x64xf32>, vector<64x1xf32>, vector<32x1xf32> -> vector<32x1xf32>
    %c2_43 = arith.constant 2 : index
    %c0_44 = arith.constant 0 : index
    %c0_45 = arith.constant 0 : index
    %54 = vector.load %arg2[%c2_43, %c0_44, %c0_45] : memref<5x32x64xf32, #tpu.memory_space<vmem>>, vector<1x32x64xf32>
    %55 = vector.shape_cast %54 : vector<1x32x64xf32> to vector<32x64xf32>
    %56 = vector.extract_strided_slice %1 {offsets = [0, 1], sizes = [64, 1], strides = [1, 1]} : vector<64x128xf32> to vector<64x1xf32>
    %cst_46 = arith.constant dense<0.000000e+00> : vector<32x1xf32>
    %57 = tpu.matmul %55, %56, %cst_46 {dimension_numbers = #tpu.dot_dimension_numbers<[1], [0], [0], [1], [0, 0, 1, 1], [], []>} : vector<32x64xf32>, vector<64x1xf32>, vector<32x1xf32> -> vector<32x1xf32>
    %58 = arith.addf %53, %57 : vector<32x1xf32>
    %c3_47 = arith.constant 3 : index
    %c0_48 = arith.constant 0 : index
    %c0_49 = arith.constant 0 : index
    %59 = vector.load %arg2[%c3_47, %c0_48, %c0_49] : memref<5x32x64xf32, #tpu.memory_space<vmem>>, vector<1x32x64xf32>
    %60 = vector.shape_cast %59 : vector<1x32x64xf32> to vector<32x64xf32>
    %61 = vector.extract_strided_slice %1 {offsets = [0, 2], sizes = [64, 1], strides = [1, 1]} : vector<64x128xf32> to vector<64x1xf32>
    %cst_50 = arith.constant dense<0.000000e+00> : vector<32x1xf32>
    %62 = tpu.matmul %60, %61, %cst_50 {dimension_numbers = #tpu.dot_dimension_numbers<[1], [0], [0], [1], [0, 0, 1, 1], [], []>} : vector<32x64xf32>, vector<64x1xf32>, vector<32x1xf32> -> vector<32x1xf32>
    %63 = arith.addf %58, %62 : vector<32x1xf32>
    %c4_51 = arith.constant 4 : index
    %c0_52 = arith.constant 0 : index
    %c0_53 = arith.constant 0 : index
    %64 = vector.load %arg2[%c4_51, %c0_52, %c0_53] : memref<5x32x64xf32, #tpu.memory_space<vmem>>, vector<1x32x64xf32>
    %65 = vector.shape_cast %64 : vector<1x32x64xf32> to vector<32x64xf32>
    %66 = vector.extract_strided_slice %1 {offsets = [0, 3], sizes = [64, 1], strides = [1, 1]} : vector<64x128xf32> to vector<64x1xf32>
    %cst_54 = arith.constant dense<0.000000e+00> : vector<32x1xf32>
    %67 = tpu.matmul %65, %66, %cst_54 {dimension_numbers = #tpu.dot_dimension_numbers<[1], [0], [0], [1], [0, 0, 1, 1], [], []>} : vector<32x64xf32>, vector<64x1xf32>, vector<32x1xf32> -> vector<32x1xf32>
    %68 = arith.addf %63, %67 : vector<32x1xf32>
    %c0_55 = arith.constant 0 : index
    %c0_56 = arith.constant 0 : index
    %69 = vector.load %arg3[%c0_55, %c0_56] : memref<32x1xf32, #tpu.memory_space<vmem>>, vector<32x1xf32>
    %70 = arith.addf %68, %69 : vector<32x1xf32>
    %cst_57 = arith.constant 0.000000e+00 : f32
    %71 = vector.broadcast %cst_57 : f32 to vector<32x1xf32>
    %72 = arith.maximumf %70, %71 : vector<32x1xf32>
    %c0_58 = arith.constant 0 : index
    %c1_59 = arith.constant 1 : index
    %73 = vector.load %arg7[%c0_58, %c1_59] : memref<32x128xf32, #tpu.memory_space<vmem>>, vector<32x1xf32>
    tpu.vector_store %arg7[%c0_58, %c1_59], %72 {strides = array<i32>} : memref<32x128xf32, #tpu.memory_space<vmem>>, vector<32x1xf32>,
    %c0_60 = arith.constant 0 : index
    %c0_61 = arith.constant 0 : index
    %c0_62 = arith.constant 0 : index
    %74 = vector.load %arg2[%c0_60, %c0_61, %c0_62] : memref<5x32x64xf32, #tpu.memory_space<vmem>>, vector<1x32x64xf32>
    %75 = vector.shape_cast %74 : vector<1x32x64xf32> to vector<32x64xf32>
    %76 = vector.extract_strided_slice %1 {offsets = [0, 124], sizes = [64, 1], strides = [1, 1]} : vector<64x128xf32> to vector<64x1xf32>
    %cst_63 = arith.constant dense<0.000000e+00> : vector<32x1xf32>
    %77 = tpu.matmul %75, %76, %cst_63 {dimension_numbers = #tpu.dot_dimension_numbers<[1], [0], [0], [1], [0, 0, 1, 1], [], []>} : vector<32x64xf32>, vector<64x1xf32>, vector<32x1xf32> -> vector<32x1xf32>
    %c1_64 = arith.constant 1 : index
    %c0_65 = arith.constant 0 : index
    %c0_66 = arith.constant 0 : index
    %78 = vector.load %arg2[%c1_64, %c0_65, %c0_66] : memref<5x32x64xf32, #tpu.memory_space<vmem>>, vector<1x32x64xf32>
    %79 = vector.shape_cast %78 : vector<1x32x64xf32> to vector<32x64xf32>
    %80 = vector.extract_strided_slice %1 {offsets = [0, 125], sizes = [64, 1], strides = [1, 1]} : vector<64x128xf32> to vector<64x1xf32>
    %cst_67 = arith.constant dense<0.000000e+00> : vector<32x1xf32>
    %81 = tpu.matmul %79, %80, %cst_67 {dimension_numbers = #tpu.dot_dimension_numbers<[1], [0], [0], [1], [0, 0, 1, 1], [], []>} : vector<32x64xf32>, vector<64x1xf32>, vector<32x1xf32> -> vector<32x1xf32>
    %82 = arith.addf %77, %81 : vector<32x1xf32>
    %c2_68 = arith.constant 2 : index
    %c0_69 = arith.constant 0 : index
    %c0_70 = arith.constant 0 : index
    %83 = vector.load %arg2[%c2_68, %c0_69, %c0_70] : memref<5x32x64xf32, #tpu.memory_space<vmem>>, vector<1x32x64xf32>
    %84 = vector.shape_cast %83 : vector<1x32x64xf32> to vector<32x64xf32>
    %85 = vector.extract_strided_slice %1 {offsets = [0, 126], sizes = [64, 1], strides = [1, 1]} : vector<64x128xf32> to vector<64x1xf32>
    %cst_71 = arith.constant dense<0.000000e+00> : vector<32x1xf32>
    %86 = tpu.matmul %84, %85, %cst_71 {dimension_numbers = #tpu.dot_dimension_numbers<[1], [0], [0], [1], [0, 0, 1, 1], [], []>} : vector<32x64xf32>, vector<64x1xf32>, vector<32x1xf32> -> vector<32x1xf32>
    %87 = arith.addf %82, %86 : vector<32x1xf32>
    %c3_72 = arith.constant 3 : index
    %c0_73 = arith.constant 0 : index
    %c0_74 = arith.constant 0 : index
    %88 = vector.load %arg2[%c3_72, %c0_73, %c0_74] : memref<5x32x64xf32, #tpu.memory_space<vmem>>, vector<1x32x64xf32>
    %89 = vector.shape_cast %88 : vector<1x32x64xf32> to vector<32x64xf32>
    %90 = vector.extract_strided_slice %1 {offsets = [0, 127], sizes = [64, 1], strides = [1, 1]} : vector<64x128xf32> to vector<64x1xf32>
    %cst_75 = arith.constant dense<0.000000e+00> : vector<32x1xf32>
    %91 = tpu.matmul %89, %90, %cst_75 {dimension_numbers = #tpu.dot_dimension_numbers<[1], [0], [0], [1], [0, 0, 1, 1], [], []>} : vector<32x64xf32>, vector<64x1xf32>, vector<32x1xf32> -> vector<32x1xf32>
    %92 = arith.addf %87, %91 : vector<32x1xf32>
    %c0_76 = arith.constant 0 : index
    %c0_77 = arith.constant 0 : index
    %93 = vector.load %arg3[%c0_76, %c0_77] : memref<32x1xf32, #tpu.memory_space<vmem>>, vector<32x1xf32>
    %94 = arith.addf %92, %93 : vector<32x1xf32>
    %cst_78 = arith.constant 0.000000e+00 : f32
    %95 = vector.broadcast %cst_78 : f32 to vector<32x1xf32>
    %96 = arith.maximumf %94, %95 : vector<32x1xf32>
    %c0_79 = arith.constant 0 : index
    %c126 = arith.constant 126 : index
    %97 = vector.load %arg7[%c0_79, %c126] : memref<32x128xf32, #tpu.memory_space<vmem>>, vector<32x1xf32>
    tpu.vector_store %arg7[%c0_79, %c126], %96 {strides = array<i32>} : memref<32x128xf32, #tpu.memory_space<vmem>>, vector<32x1xf32>,
    %c0_80 = arith.constant 0 : index
    %c0_81 = arith.constant 0 : index
    %c0_82 = arith.constant 0 : index
    %98 = vector.load %arg2[%c0_80, %c0_81, %c0_82] : memref<5x32x64xf32, #tpu.memory_space<vmem>>, vector<1x32x64xf32>
    %99 = vector.shape_cast %98 : vector<1x32x64xf32> to vector<32x64xf32>
    %100 = vector.extract_strided_slice %1 {offsets = [0, 125], sizes = [64, 1], strides = [1, 1]} : vector<64x128xf32> to vector<64x1xf32>
    %cst_83 = arith.constant dense<0.000000e+00> : vector<32x1xf32>
    %101 = tpu.matmul %99, %100, %cst_83 {dimension_numbers = #tpu.dot_dimension_numbers<[1], [0], [0], [1], [0, 0, 1, 1], [], []>} : vector<32x64xf32>, vector<64x1xf32>, vector<32x1xf32> -> vector<32x1xf32>
    %c1_84 = arith.constant 1 : index
    %c0_85 = arith.constant 0 : index
    %c0_86 = arith.constant 0 : index
    %102 = vector.load %arg2[%c1_84, %c0_85, %c0_86] : memref<5x32x64xf32, #tpu.memory_space<vmem>>, vector<1x32x64xf32>
    %103 = vector.shape_cast %102 : vector<1x32x64xf32> to vector<32x64xf32>
    %104 = vector.extract_strided_slice %1 {offsets = [0, 126], sizes = [64, 1], strides = [1, 1]} : vector<64x128xf32> to vector<64x1xf32>
    %cst_87 = arith.constant dense<0.000000e+00> : vector<32x1xf32>
    %105 = tpu.matmul %103, %104, %cst_87 {dimension_numbers = #tpu.dot_dimension_numbers<[1], [0], [0], [1], [0, 0, 1, 1], [], []>} : vector<32x64xf32>, vector<64x1xf32>, vector<32x1xf32> -> vector<32x1xf32>
    %106 = arith.addf %101, %105 : vector<32x1xf32>
    %c2_88 = arith.constant 2 : index
    %c0_89 = arith.constant 0 : index
    %c0_90 = arith.constant 0 : index
    %107 = vector.load %arg2[%c2_88, %c0_89, %c0_90] : memref<5x32x64xf32, #tpu.memory_space<vmem>>, vector<1x32x64xf32>
    %108 = vector.shape_cast %107 : vector<1x32x64xf32> to vector<32x64xf32>
    %109 = vector.extract_strided_slice %1 {offsets = [0, 127], sizes = [64, 1], strides = [1, 1]} : vector<64x128xf32> to vector<64x1xf32>
    %cst_91 = arith.constant dense<0.000000e+00> : vector<32x1xf32>
    %110 = tpu.matmul %108, %109, %cst_91 {dimension_numbers = #tpu.dot_dimension_numbers<[1], [0], [0], [1], [0, 0, 1, 1], [], []>} : vector<32x64xf32>, vector<64x1xf32>, vector<32x1xf32> -> vector<32x1xf32>
    %111 = arith.addf %106, %110 : vector<32x1xf32>
    %c0_92 = arith.constant 0 : index
    %c0_93 = arith.constant 0 : index
    %112 = vector.load %arg3[%c0_92, %c0_93] : memref<32x1xf32, #tpu.memory_space<vmem>>, vector<32x1xf32>
    %113 = arith.addf %111, %112 : vector<32x1xf32>
    %cst_94 = arith.constant 0.000000e+00 : f32
    %114 = vector.broadcast %cst_94 : f32 to vector<32x1xf32>
    %115 = arith.maximumf %113, %114 : vector<32x1xf32>
    %c0_95 = arith.constant 0 : index
    %c127 = arith.constant 127 : index
    %116 = vector.load %arg7[%c0_95, %c127] : memref<32x128xf32, #tpu.memory_space<vmem>>, vector<32x1xf32>
    tpu.vector_store %arg7[%c0_95, %c127], %115 {strides = array<i32>} : memref<32x128xf32, #tpu.memory_space<vmem>>, vector<32x1xf32>,
    %c0_96 = arith.constant 0 : index
    %c0_97 = arith.constant 0 : index
    %117 = vector.load %arg7[%c0_96, %c0_97] : memref<32x128xf32, #tpu.memory_space<vmem>>, vector<32x128xf32>
    %c1_98 = arith.constant 1 : index
    %c0_99 = arith.constant 0 : index
    %c0_100 = arith.constant 0 : index
    %118 = vector.load %arg4[%c1_98, %c0_99, %c0_100] : memref<3x2x32xf32, #tpu.memory_space<vmem>>, vector<1x2x32xf32>
    %119 = vector.shape_cast %118 : vector<1x2x32xf32> to vector<2x32xf32>
    %cst_101 = arith.constant dense<0.000000e+00> : vector<2x128xf32>
    %120 = tpu.matmul %119, %117, %cst_101 {dimension_numbers = #tpu.dot_dimension_numbers<[1], [0], [0], [1], [0, 0, 1, 1], [], []>} : vector<2x32xf32>, vector<32x128xf32>, vector<2x128xf32> -> vector<2x128xf32>
    %c0_102 = arith.constant 0 : index
    %c0_103 = arith.constant 0 : index
    %c0_104 = arith.constant 0 : index
    %121 = vector.load %arg4[%c0_102, %c0_103, %c0_104] : memref<3x2x32xf32, #tpu.memory_space<vmem>>, vector<1x2x32xf32>
    %122 = vector.shape_cast %121 : vector<1x2x32xf32> to vector<2x32xf32>
    %cst_105 = arith.constant dense<0.000000e+00> : vector<2x128xf32>
    %123 = tpu.matmul %122, %117, %cst_105 {dimension_numbers = #tpu.dot_dimension_numbers<[1], [0], [0], [1], [0, 0, 1, 1], [], []>} : vector<2x32xf32>, vector<32x128xf32>, vector<2x128xf32> -> vector<2x128xf32>
    %c1_i32_106 = arith.constant 1 : i32
    %124 = tpu.dynamic_rotate %123 by %c1_i32_106 dim 1 : vector<2x128xf32>, i32 -> vector<2x128xf32>
    %125 = arith.addf %120, %124 : vector<2x128xf32>
    %c2_107 = arith.constant 2 : index
    %c0_108 = arith.constant 0 : index
    %c0_109 = arith.constant 0 : index
    %126 = vector.load %arg4[%c2_107, %c0_108, %c0_109] : memref<3x2x32xf32, #tpu.memory_space<vmem>>, vector<1x2x32xf32>
    %127 = vector.shape_cast %126 : vector<1x2x32xf32> to vector<2x32xf32>
    %cst_110 = arith.constant dense<0.000000e+00> : vector<2x128xf32>
    %128 = tpu.matmul %127, %117, %cst_110 {dimension_numbers = #tpu.dot_dimension_numbers<[1], [0], [0], [1], [0, 0, 1, 1], [], []>} : vector<2x32xf32>, vector<32x128xf32>, vector<2x128xf32> -> vector<2x128xf32>
    %c127_i32_111 = arith.constant 127 : i32
    %129 = tpu.dynamic_rotate %128 by %c127_i32_111 dim 1 : vector<2x128xf32>, i32 -> vector<2x128xf32>
    %130 = arith.addf %125, %129 : vector<2x128xf32>
    %c0_112 = arith.constant 0 : index
    %c0_113 = arith.constant 0 : index
    %131 = vector.load %arg5[%c0_112, %c0_113] : memref<1x1xf32, #tpu.memory_space<vmem>>, vector<1x1xf32>
    %132 = vector.broadcast %131 : vector<1x1xf32> to vector<2x128xf32>
    %133 = arith.addf %130, %132 : vector<2x128xf32>
    %cst_114 = arith.constant 0.000000e+00 : f32
    %134 = vector.broadcast %cst_114 : f32 to vector<2x128xf32>
    %135 = arith.subf %134, %133 : vector<2x128xf32>
    %136 = math.exp %135 : vector<2x128xf32>
    %cst_115 = arith.constant 1.000000e+00 : f32
    %137 = vector.broadcast %cst_115 : f32 to vector<2x128xf32>
    %138 = arith.addf %137, %136 : vector<2x128xf32>
    %139 = tpu.reciprocal %138 {approx = true} : vector<2x128xf32> -> vector<2x128xf32>
    %c0_116 = arith.constant 0 : index
    %c0_117 = arith.constant 0 : index
    %c0_118 = arith.constant 0 : index
    %140 = vector.load %arg6[%c0_116, %c0_117, %c0_118] : memref<1x2x128xf32, #tpu.memory_space<vmem>>, vector<1x2x128xf32>
    %141 = vector.shape_cast %140 : vector<1x2x128xf32> to vector<2x128xf32>
    %142 = vector.shape_cast %139 : vector<2x128xf32> to vector<1x2x128xf32>
    tpu.vector_store %arg6[%c0_116, %c0_117, %c0_118], %142 {strides = array<i32>} : memref<1x2x128xf32, #tpu.memory_space<vmem>>, vector<1x2x128xf32>,
    %c1_119 = arith.constant 1 : index
    %c0_120 = arith.constant 0 : index
    %c0_121 = arith.constant 0 : index
    %143 = vector.load %arg4[%c1_119, %c0_120, %c0_121] : memref<3x2x32xf32, #tpu.memory_space<vmem>>, vector<1x2x32xf32>
    %144 = vector.shape_cast %143 : vector<1x2x32xf32> to vector<2x32xf32>
    %145 = vector.extract_strided_slice %117 {offsets = [0, 0], sizes = [32, 1], strides = [1, 1]} : vector<32x128xf32> to vector<32x1xf32>
    %cst_122 = arith.constant dense<0.000000e+00> : vector<2x1xf32>
    %146 = tpu.matmul %144, %145, %cst_122 {dimension_numbers = #tpu.dot_dimension_numbers<[1], [0], [0], [1], [0, 0, 1, 1], [], []>} : vector<2x32xf32>, vector<32x1xf32>, vector<2x1xf32> -> vector<2x1xf32>
    %c2_123 = arith.constant 2 : index
    %c0_124 = arith.constant 0 : index
    %c0_125 = arith.constant 0 : index
    %147 = vector.load %arg4[%c2_123, %c0_124, %c0_125] : memref<3x2x32xf32, #tpu.memory_space<vmem>>, vector<1x2x32xf32>
    %148 = vector.shape_cast %147 : vector<1x2x32xf32> to vector<2x32xf32>
    %149 = vector.extract_strided_slice %117 {offsets = [0, 1], sizes = [32, 1], strides = [1, 1]} : vector<32x128xf32> to vector<32x1xf32>
    %cst_126 = arith.constant dense<0.000000e+00> : vector<2x1xf32>
    %150 = tpu.matmul %148, %149, %cst_126 {dimension_numbers = #tpu.dot_dimension_numbers<[1], [0], [0], [1], [0, 0, 1, 1], [], []>} : vector<2x32xf32>, vector<32x1xf32>, vector<2x1xf32> -> vector<2x1xf32>
    %151 = arith.addf %146, %150 : vector<2x1xf32>
    %c0_127 = arith.constant 0 : index
    %c0_128 = arith.constant 0 : index
    %152 = vector.load %arg5[%c0_127, %c0_128] : memref<1x1xf32, #tpu.memory_space<vmem>>, vector<1x1xf32>
    %153 = vector.broadcast %152 : vector<1x1xf32> to vector<2x1xf32>
    %154 = arith.addf %151, %153 : vector<2x1xf32>
    %cst_129 = arith.constant 0.000000e+00 : f32
    %155 = vector.broadcast %cst_129 : f32 to vector<2x1xf32>
    %156 = arith.subf %155, %154 : vector<2x1xf32>
    %157 = math.exp %156 : vector<2x1xf32>
    %cst_130 = arith.constant 1.000000e+00 : f32
    %158 = vector.broadcast %cst_130 : f32 to vector<2x1xf32>
    %159 = arith.addf %158, %157 : vector<2x1xf32>
    %160 = tpu.reciprocal %159 {approx = true} : vector<2x1xf32> -> vector<2x1xf32>
    %c0_131 = arith.constant 0 : index
    %c0_132 = arith.constant 0 : index
    %c0_133 = arith.constant 0 : index
    %161 = vector.load %arg6[%c0_131, %c0_132, %c0_133] : memref<1x2x128xf32, #tpu.memory_space<vmem>>, vector<1x2x1xf32>
    %162 = vector.shape_cast %161 : vector<1x2x1xf32> to vector<2x1xf32>
    %163 = vector.shape_cast %160 : vector<2x1xf32> to vector<1x2x1xf32>
    tpu.vector_store %arg6[%c0_131, %c0_132, %c0_133], %163 {strides = array<i32>} : memref<1x2x128xf32, #tpu.memory_space<vmem>>, vector<1x2x1xf32>,
    %c0_134 = arith.constant 0 : index
    %c0_135 = arith.constant 0 : index
    %c0_136 = arith.constant 0 : index
    %164 = vector.load %arg4[%c0_134, %c0_135, %c0_136] : memref<3x2x32xf32, #tpu.memory_space<vmem>>, vector<1x2x32xf32>
    %165 = vector.shape_cast %164 : vector<1x2x32xf32> to vector<2x32xf32>
    %166 = vector.extract_strided_slice %117 {offsets = [0, 126], sizes = [32, 1], strides = [1, 1]} : vector<32x128xf32> to vector<32x1xf32>
    %cst_137 = arith.constant dense<0.000000e+00> : vector<2x1xf32>
    %167 = tpu.matmul %165, %166, %cst_137 {dimension_numbers = #tpu.dot_dimension_numbers<[1], [0], [0], [1], [0, 0, 1, 1], [], []>} : vector<2x32xf32>, vector<32x1xf32>, vector<2x1xf32> -> vector<2x1xf32>
    %c1_138 = arith.constant 1 : index
    %c0_139 = arith.constant 0 : index
    %c0_140 = arith.constant 0 : index
    %168 = vector.load %arg4[%c1_138, %c0_139, %c0_140] : memref<3x2x32xf32, #tpu.memory_space<vmem>>, vector<1x2x32xf32>
    %169 = vector.shape_cast %168 : vector<1x2x32xf32> to vector<2x32xf32>
    %170 = vector.extract_strided_slice %117 {offsets = [0, 127], sizes = [32, 1], strides = [1, 1]} : vector<32x128xf32> to vector<32x1xf32>
    %cst_141 = arith.constant dense<0.000000e+00> : vector<2x1xf32>
    %171 = tpu.matmul %169, %170, %cst_141 {dimension_numbers = #tpu.dot_dimension_numbers<[1], [0], [0], [1], [0, 0, 1, 1], [], []>} : vector<2x32xf32>, vector<32x1xf32>, vector<2x1xf32> -> vector<2x1xf32>
    %172 = arith.addf %167, %171 : vector<2x1xf32>
    %c0_142 = arith.constant 0 : index
    %c0_143 = arith.constant 0 : index
    %173 = vector.load %arg5[%c0_142, %c0_143] : memref<1x1xf32, #tpu.memory_space<vmem>>, vector<1x1xf32>
    %174 = vector.broadcast %173 : vector<1x1xf32> to vector<2x1xf32>
    %175 = arith.addf %172, %174 : vector<2x1xf32>
    %cst_144 = arith.constant 0.000000e+00 : f32
    %176 = vector.broadcast %cst_144 : f32 to vector<2x1xf32>
    %177 = arith.subf %176, %175 : vector<2x1xf32>
    %178 = math.exp %177 : vector<2x1xf32>
    %cst_145 = arith.constant 1.000000e+00 : f32
    %179 = vector.broadcast %cst_145 : f32 to vector<2x1xf32>
    %180 = arith.addf %179, %178 : vector<2x1xf32>
    %181 = tpu.reciprocal %180 {approx = true} : vector<2x1xf32> -> vector<2x1xf32>
    %c0_146 = arith.constant 0 : index
    %c0_147 = arith.constant 0 : index
    %c127_148 = arith.constant 127 : index
    %182 = vector.load %arg6[%c0_146, %c0_147, %c127_148] : memref<1x2x128xf32, #tpu.memory_space<vmem>>, vector<1x2x1xf32>
    %183 = vector.shape_cast %182 : vector<1x2x1xf32> to vector<2x1xf32>
    %184 = vector.shape_cast %181 : vector<2x1xf32> to vector<1x2x1xf32>
    tpu.vector_store %arg6[%c0_146, %c0_147, %c127_148], %184 {strides = array<i32>} : memref<1x2x128xf32, #tpu.memory_space<vmem>>, vector<1x2x1xf32>,
    return
  }
  func.func @transform_0(%arg0: i32) -> (i32, i32, i32) {
    %c0_i32 = arith.constant 0 : i32
    %c0_i32_0 = arith.constant 0 : i32
    %c0_i32_1 = arith.constant 0 : i32
    return %arg0, %c0_i32, %c0_i32_0 : i32, i32, i32
  }
  func.func @transform_1(%arg0: i32) -> (i32, i32, i32) {
    %c0_i32 = arith.constant 0 : i32
    %c0_i32_0 = arith.constant 0 : i32
    %c0_i32_1 = arith.constant 0 : i32
    %c0_i32_2 = arith.constant 0 : i32
    return %c0_i32, %c0_i32_0, %c0_i32_1 : i32, i32, i32
  }
  func.func @transform_2(%arg0: i32) -> (i32, i32) {
    %c0_i32 = arith.constant 0 : i32
    %c0_i32_0 = arith.constant 0 : i32
    %c0_i32_1 = arith.constant 0 : i32
    return %c0_i32, %c0_i32_0 : i32, i32
  }
  func.func @transform_3(%arg0: i32) -> (i32, i32, i32) {
    %c0_i32 = arith.constant 0 : i32
    %c0_i32_0 = arith.constant 0 : i32
    %c0_i32_1 = arith.constant 0 : i32
    %c0_i32_2 = arith.constant 0 : i32
    return %c0_i32, %c0_i32_0, %c0_i32_1 : i32, i32, i32
  }
  func.func @transform_4(%arg0: i32) -> (i32, i32) {
    %c0_i32 = arith.constant 0 : i32
    %c0_i32_0 = arith.constant 0 : i32
    %c0_i32_1 = arith.constant 0 : i32
    return %c0_i32, %c0_i32_0 : i32, i32
  }
  func.func @transform_5(%arg0: i32) -> (i32, i32, i32) {
    %c0_i32 = arith.constant 0 : i32
    %c0_i32_0 = arith.constant 0 : i32
    %c0_i32_1 = arith.constant 0 : i32
    return %arg0, %c0_i32, %c0_i32_0 : i32, i32, i32
  }
}

</mosaic_0001>

<bundles_post_ra>
// kernel: gen_coder_decoder_forward.2
= control target key start
LH: loop header
LB: loop body
LE: loop exit
PB: predicated region body
PF: predicated region fallthrough
CT: control target
= control target key end

     0   :  { %s1189_s12 = smov 0   ;;  %s1191_s13 = smov 0   ;;  %s1385_s0 = inlined_call_operand.vmem [shape: bf16[2,20], index: 0, kind: input, shape index: {}]   ;;  %s1386_s1 = inlined_call_operand.vmem [shape: bf16[64,20,128], index: 1, kind: input, shape index: {}]   ;;  %s1387_s2 = inlined_call_operand.vmem [shape: f32[64,1,128], index: 2, kind: input, shape index: {}]   ;;  %s1388_s3 = inlined_call_operand.vmem [shape: f32[2,64,128], index: 3, kind: output, shape index: {}]  }
   0x1   :  { %s1193_s14 = smov 0  }
   0x2 LB: > { %s933_s15 = sadd.s32 4294967295, %s1167_s14   ;;  %s1202_s16 = sadd.s32 1, %s1167_s14   ;;  %s1167_s14 = sphi %s1193_s14, %s1392_s14   ;;  %s1163_s13 = sphi %s1191_s13, %s1391_s13   ;;  %s1159_s12 = sphi %s1189_s12, %s1390_s12  }
   0x3   : > { %s90_s17 = ssub.s32 %s1167_s14, %s1202_s16  ;;  %s93_s18 = sadd.s32 1, %s1163_s13 }
   0x4   : > { %p91_p0 = scmp.eq.s32.totalorder %s90_s17, 0  ;;  %p103_p1 = scmp.ne.s32.totalorder %s1163_s13, %s1159_s12 }
   0x5   : > { %p104_p2 = scmp.eq.s32.totalorder %s933_s15, 3  ;;  %p937_p3 = scmp.ge.s32.totalorder %s1167_s14, 1 }
   0x6   : > { %s1209_s19 = scalar_select %p91_p0, %s1163_s13, %s93_s18  }
   0x7   : > { %p1211_p4 = por %p104_p2, %p103_p1  ;;  %p149_p5 = scmp.lt.s32.totalorder %s1167_s14, 5 }
   0x9   : > { %p150_p6 = pnand %p937_p3, %p149_p5 }
   0xa   : > { %s1215_s21 = sshll.u32 (!%p150_p6), %s933_s15, 4  ;;  %s174_s5 = sand.u32 (!%p150_p6), 1, %s1159_s12  }
   0xb   : > { %153 = sbr.rel (%p150_p6) target bundleno = 229 (0xe5), region = 32  ;;  %p178_p7 = scmp.lt.s32.totalorder (!%p150_p6), %s1215_s21, 63 }
   0xc   : > { %s938_s6 = sshll.u32 (!%p150_p6), %s174_s5, 5 }
   0xd   : > { %s1317_s7 = scalar_lea.vmem (!%p150_p6), [#allocation2], %s938_s6 }
  0x10   : > { %s179_s22 = scalar_select %p178_p7, %s1215_s21, 63  ;;  %vm212_vm0 = vcmask 1041408   ;;  %vm208_vm1 = vcmask 162816   ;;  %v1252_v36 = vld [vmem:[%s1385_s0] sm:$0x1] }
  0x11   : > { %s828_s10 = scalar_lea.vmem (%p1211_p4), %s1388_s3, %s1215_s21 }
  0x12   : > { %s1104_s23 = smul.u32 12, %s179_s22  ;;  %s1222_s26 = scalar_lea.vmem %s1387_s2, %s179_s22 }
  0x14   : > { %s1227_s29 = scalar_lea.vmem %s1386_s1, %s1104_s23 }
  0x15   : > { %v194_v0 = vld [vmem:[%s1227_s29 + $0x8] sm:$0x3]  ;;  %v949_v1 = vld [vmem:[%s1227_s29 + $0x14] sm:$0x3]  ;;  %v958_v2 = vld [vmem:[%s1227_s29 + $0x20] sm:$0x3] }
  0x16   : > { %v204_v3 = vunpack.c.l.b16 %v194_v0  ;;  %v248_v4 = vunpack.c.l.b16 %v949_v1  ;;  %v287_v5 = vunpack.c.l.b16 %v958_v2  ;;  %v967_v6 = vld [vmem:[%s1227_s29 + $0x2c] sm:$0x3]  ;;  %v994_v8 = vld [vmem:[%s1227_s29 + $0x50] sm:$0x3]  ;;  %v1003_v13 = vld [vmem:[%s1227_s29 + $0x5c] sm:$0x3] }
  0x17   : > { %v326_v7 = vunpack.c.l.b16 %v967_v6  ;;  %v443_v12 = vunpack.c.l.b16 %v994_v8  ;;  %v976_v14 = vld [vmem:[%s1227_s29 + $0x38] sm:$0x3]  ;;  %v985_v15 = vld [vmem:[%s1227_s29 + $0x44] sm:$0x3]  ;;  %v482_v17 = vunpack.c.l.b16 %v1003_v13  ;;  %v1030_v25 = vld [vmem:[%s1227_s29 + $0x80] sm:$0x3] }
  0x18   : > { %v206_v9 = vpack.c.b16 %v204_v3, %v204_v3  ;;  %v250_v10 = vpack.c.b16 %v248_v4, %v248_v4  ;;  %v289_v11 = vpack.c.b16 %v287_v5, %v287_v5  ;;  %v365_v18 = vunpack.c.l.b16 %v976_v14  ;;  %v1087_v23 = vld [vmem:[%s1227_s29] sm:$0xff]  ;;  %v1088_v27 = vld [vmem:[%s1227_s29 + $0xc] sm:$0xff]  ;;  %v1012_v30 = vld [vmem:[%s1227_s29 + $0x68] sm:$0x3] }
  0x19   : > { %v328_v16 = vpack.c.b16 %v326_v7, %v326_v7  ;;  %v404_v19 = vunpack.c.l.b16 %v985_v15  ;;  %v445_v24 = vpack.c.b16 %v443_v12, %v443_v12  ;;  %v484_v28 = vpack.c.b16 %v482_v17, %v482_v17  ;;  %v1039_v29 = vld [vmem:[%s1227_s29 + $0x8c] sm:$0x3]  ;;  %v1089_v31 = vld [vmem:[%s1227_s29 + $0x18] sm:$0xff]  ;;  %v1090_v32 = vld [vmem:[%s1227_s29 + $0x24] sm:$0xff] }
  0x1a   : > { %v214_v20 = vsel %vm212_vm0, %v206_v9, 0  ;;  %v253_v21 = vsel %vm212_vm0, %v250_v10, 0  ;;  %v292_v22 = vsel %vm212_vm0, %v289_v11, 0  ;;  %v599_v33 = vunpack.c.l.b16 %v1030_v25  ;;  %v1021_v35 = vld [vmem:[%s1227_s29 + $0x74] sm:$0x3]  ;;  %v1093_v45 = vld [vmem:[%s1227_s29 + $0x48] sm:$0xff] }
  0x1b   : > { %222 = vmatpush.bf16.msra.mxu0 %v214_v20  ;;  %261 = vmatpush.bf16.msra.mxu1 %v253_v21  ;;  %v331_v26 = vsel %vm212_vm0, %v328_v16, 0  ;;  %v638_v34 = vunpack.c.l.b16 %v1039_v29  ;;  %v448_v37 = vsel %vm212_vm0, %v445_v24, 0  ;;  %v487_v38 = vsel %vm212_vm0, %v484_v28, 0  ;;  %v1094_v46 = vld [vmem:[%s1227_s29 + $0x54] sm:$0xff]  ;;  %v1092_v54 = vld [vmem:[%s1227_s29 + $0x3c] sm:$0xff]  ;;  %v1098_v56 = vld [vmem:[%s1227_s29 + $0x84] sm:$0xff] }
  0x1c   : > { %300 = vmatpush.bf16.msra.mxu2 %v292_v22  ;;  %339 = vmatpush.bf16.msra.mxu3 %v331_v26  ;;  %v367_v39 = vpack.c.b16 %v365_v18, %v365_v18  ;;  %v406_v40 = vpack.c.b16 %v404_v19, %v404_v19  ;;  %v521_v41 = vunpack.c.l.b16 %v1012_v30  ;;  %v560_v42 = vunpack.c.l.b16 %v1021_v35  ;;  %v1091_v53 = vld [vmem:[%s1227_s29 + $0x30] sm:$0xff]  ;;  %v1097_v55 = vld [vmem:[%s1227_s29 + $0x78] sm:$0xff]  ;;  %v1057_v62 = vld [vmem:[%s1227_s29 + $0xa4] sm:$0x3] }
  0x1d   : > { %v601_v43 = vpack.c.b16 %v599_v33, %v599_v33  ;;  %v640_v44 = vpack.c.b16 %v638_v34, %v638_v34  ;;  %v1066_v59 = vld [vmem:[%s1227_s29 + $0xb0] sm:$0x3]  ;;  %v1075_v60 = vld [vmem:[%s1227_s29 + $0xbc] sm:$0x3]  ;;  %v1048_v61 = vld [vmem:[%s1227_s29 + $0x98] sm:$0x3]  ;;  %v716_v4 = vunpack.c.l.b16 %v1057_v62 }
  0x1e   : > { %v370_v47 = vsel %vm212_vm0, %v367_v39, 0  ;;  %v409_v48 = vsel %vm212_vm0, %v406_v40, 0  ;;  %v523_v49 = vpack.c.b16 %v521_v41, %v521_v41  ;;  %v562_v50 = vpack.c.b16 %v560_v42, %v560_v42  ;;  %v1095_v63 = vld [vmem:[%s1227_s29 + $0x60] sm:$0xff]  ;;  %v1096_v0 = vld [vmem:[%s1227_s29 + $0x6c] sm:$0xff]  ;;  %v1102_v14 = vld [vmem:[%s1227_s29 + $0xb4] sm:$0xff] }
  0x1f   : > { %223 = vmatpush.bf16.msra.mxu0 %v1087_v23  ;;  %262 = vmatpush.bf16.msra.mxu1 %v1088_v27  ;;  %v604_v51 = vsel %vm212_vm0, %v601_v43, 0  ;;  %v643_v52 = vsel %vm212_vm0, %v640_v44, 0  ;;  %v755_v1 = vunpack.c.l.b16 %v1066_v59  ;;  %v794_v2 = vunpack.c.l.b16 %v1075_v60  ;;  %v1101_v13 = vld [vmem:[%s1227_s29 + $0xa8] sm:$0xff]  ;;  %v1099_v15 = vld [vmem:[%s1227_s29 + $0x90] sm:$0xff]  ;;  %v1100_v16 = vld [vmem:[%s1227_s29 + $0x9c] sm:$0xff] }
  0x20   : > { %301 = vmatpush.bf16.msra.mxu2 %v1089_v31  ;;  %340 = vmatpush.bf16.msra.mxu3 %v1090_v32  ;;  %v526_v57 = vsel %vm212_vm0, %v523_v49, 0  ;;  %v565_v58 = vsel %vm212_vm0, %v562_v50, 0  ;;  %v677_v3 = vunpack.c.l.b16 %v1048_v61  ;;  %v718_v8 = vpack.c.b16 %v716_v4, %v716_v4  ;;  %v1129_v17 = vld [vmem:[%s1222_s26] ss:$0 sm:$0xff]  ;;  %v1130_v18 = vld [vmem:[%s1222_s26 + $0x1] ss:$0 sm:$0xff] }
  0x21   : > { %v757_v5 = vpack.c.b16 %v755_v1, %v755_v1  ;;  %v796_v6 = vpack.c.b16 %v794_v2, %v794_v2  ;;  %v1131_v25 = vld [vmem:[%s1222_s26 + $0x2] ss:$0 sm:$0xff]  ;;  %v1132_v26 = vld [vmem:[%s1222_s26 + $0x3] ss:$0 sm:$0xff]  ;;  %v1133_v35 = vld [vmem:[%s1222_s26 + $0x4] ss:$0 sm:$0xff] }
  0x22   : > { %946 = vmatmul.msk.bf16.vlgmr.msra.gmra.mxu0 %vm208_vm1, %v1252_v36  ;;  %955 = vmatmul.msk.bf16.vlgmr.msra.gmra.mxu1 %vm208_vm1, %v1252_v36  ;;  %v679_v7 = vpack.c.b16 %v677_v3, %v677_v3  ;;  %v721_v12 = vsel %vm212_vm0, %v718_v8, 0  ;;  %v1139_v1 = vld [vmem:[%s1222_s26 + $0xa] ss:$0 sm:$0xff]  ;;  %v1140_v2 = vld [vmem:[%s1222_s26 + $0xb] ss:$0 sm:$0xff] }
  0x23   : > { %964 = vmatmul.msk.bf16.vlgmr.msra.gmra.mxu2 %vm208_vm1, %v1252_v36  ;;  %973 = vmatmul.msk.bf16.vlgmr.msra.gmra.mxu3 %vm208_vm1, %v1252_v36  ;;  %v760_v9 = vsel %vm212_vm0, %v757_v5, 0  ;;  %v799_v10 = vsel %vm212_vm0, %v796_v6, 0 }
  0x24   : > { %456 = vmatpush.bf16.msrb.mxu2 %v448_v37  ;;  %495 = vmatpush.bf16.msrb.mxu3 %v487_v38  ;;  %v682_v11 = vsel %vm212_vm0, %v679_v7, 0 }
  0x25   : > { %378 = vmatpush.bf16.msrb.mxu0 %v370_v47  ;;  %417 = vmatpush.bf16.msrb.mxu1 %v409_v48 }
  0x28   : > { %457 = vmatpush.bf16.msrb.mxu2 %v1093_v45  ;;  %496 = vmatpush.bf16.msrb.mxu3 %v1094_v46  ;;  %v1135_v45 = vld [vmem:[%s1222_s26 + $0x6] ss:$0 sm:$0xff]  ;;  %v1136_v46 = vld [vmem:[%s1222_s26 + $0x7] ss:$0 sm:$0xff] }
  0x29   : > { %379 = vmatpush.bf16.msrb.mxu0 %v1091_v53  ;;  %418 = vmatpush.bf16.msrb.mxu1 %v1092_v54 }
  0x2c   : > { %612 = vmatpush.bf16.msra.mxu2 %v604_v51  ;;  %651 = vmatpush.bf16.msra.mxu3 %v643_v52 }
  0x2d   : > { %534 = vmatpush.bf16.msra.mxu0 %v526_v57  ;;  %573 = vmatpush.bf16.msra.mxu1 %v565_v58 }
  0x30   : > { %613 = vmatpush.bf16.msra.mxu2 %v1097_v55  ;;  %652 = vmatpush.bf16.msra.mxu3 %v1098_v56  ;;  %v1137_v55 = vld [vmem:[%s1222_s26 + $0x8] ss:$0 sm:$0xff]  ;;  %v1138_v56 = vld [vmem:[%s1222_s26 + $0x9] ss:$0 sm:$0xff] }
  0x31   : > { %535 = vmatpush.bf16.msra.mxu0 %v1095_v63  ;;  %574 = vmatpush.bf16.msra.mxu1 %v1096_v0 }
  0x32   : > { %982 = vmatmul.msk.bf16.vlgmr.msrb.gmra.mxu0 %vm208_vm1, %v1252_v36  ;;  %991 = vmatmul.msk.bf16.vlgmr.msrb.gmra.mxu1 %vm208_vm1, %v1252_v36 }
  0x33   : > { %1000 = vmatmul.msk.bf16.vlgmr.msrb.gmra.mxu2 %vm208_vm1, %v1252_v36  ;;  %1009 = vmatmul.msk.bf16.vlgmr.msrb.gmra.mxu3 %vm208_vm1, %v1252_v36 }
  0x34   : > { %768 = vmatpush.bf16.msrb.mxu2 %v760_v9  ;;  %807 = vmatpush.bf16.msrb.mxu3 %v799_v10 }
  0x35   : > { %690 = vmatpush.bf16.msrb.mxu0 %v682_v11  ;;  %729 = vmatpush.bf16.msrb.mxu1 %v721_v12  ;;  %v1141_v11 = vld [vmem:[%s1222_s26 + $0xc] ss:$0 sm:$0xff]  ;;  %v1142_v12 = vld [vmem:[%s1222_s26 + $0xd] ss:$0 sm:$0xff] }
  0x38   : > { %769 = vmatpush.bf16.msrb.mxu2 %v1101_v13  ;;  %808 = vmatpush.bf16.msrb.mxu3 %v1102_v14 }
  0x39   : > { %691 = vmatpush.bf16.msrb.mxu0 %v1099_v15  ;;  %730 = vmatpush.bf16.msrb.mxu1 %v1100_v16 }
  0x42   : > { %1018 = vmatmul.msk.bf16.vlgmr.msra.gmra.mxu0 %vm208_vm1, %v1252_v36  ;;  %1027 = vmatmul.msk.bf16.vlgmr.msra.gmra.mxu1 %vm208_vm1, %v1252_v36 }
  0x43   : > { %1036 = vmatmul.msk.bf16.vlgmr.msra.gmra.mxu2 %vm208_vm1, %v1252_v36  ;;  %1045 = vmatmul.msk.bf16.vlgmr.msra.gmra.mxu3 %vm208_vm1, %v1252_v36 }
  0x52   : > { %1054 = vmatmul.msk.bf16.vlgmr.msrb.gmra.mxu0 %vm208_vm1, %v1252_v36  ;;  %1063 = vmatmul.msk.bf16.vlgmr.msrb.gmra.mxu1 %vm208_vm1, %v1252_v36 }
  0x53   : > { %1072 = vmatmul.msk.bf16.vlgmr.msrb.gmra.mxu2 %vm208_vm1, %v1252_v36  ;;  %1081 = vmatmul.msk.bf16.vlgmr.msrb.gmra.mxu3 %vm208_vm1, %v1252_v36  ;;  %v1134_v36 = vld [vmem:[%s1222_s26 + $0x5] ss:$0 sm:$0xff] }
  0x9f   : > { %v225_v19 = vpop.f32.mrf.mxu0  ;;  %v264_v20 = vpop.f32.mrf.mxu1 }
  0xa0   : > { %v226_v21 = vadd.f32 %v1129_v17, %v225_v19  ;;  %v265_v22 = vadd.f32 %v1130_v18, %v264_v20 }
  0xa2   : > { %v230_v23 = vrot.slane %v226_v21, 1  ;;  %232 = vst [vmem:[%s1317_s7] sm:$0x1] %v226_v21  ;;  %v269_v24 = vrot.slane %v265_v22, 1  ;;  %v1143_v21 = vld [vmem:[%s1222_s26 + $0xe] ss:$0 sm:$0xff] }
  0xa3   : > { %271 = vst [vmem:[%s1317_s7 + $0x1] sm:$0x1] %v265_v22  ;;  %v1144_v22 = vld [vmem:[%s1222_s26 + $0xf] ss:$0 sm:$0xff] }
  0xa4   : > { %233 = vst [vmem:[%s1317_s7 + $0x10] sm:$0x1] %v230_v23 }
  0xa5   : > { %272 = vst [vmem:[%s1317_s7 + $0x11] sm:$0x1] %v269_v24 }
  0xa6   : > { %v303_v27 = vpop.f32.mrf.mxu2  ;;  %v342_v28 = vpop.f32.mrf.mxu3 }
  0xa7   : > { %v304_v29 = vadd.f32 %v1131_v25, %v303_v27  ;;  %v343_v30 = vadd.f32 %v1132_v26, %v342_v28  ;;  %v227_v31 = vpop.f32.mrf.mxu0  ;;  %v266_v32 = vpop.f32.mrf.mxu1 }
  0xa9   : > { %v308_v33 = vrot.slane %v304_v29, 1  ;;  %310 = vst [vmem:[%s1317_s7 + $0x2] sm:$0x1] %v304_v29  ;;  %v347_v34 = vrot.slane %v343_v30, 1 }
  0xaa   : > { %349 = vst [vmem:[%s1317_s7 + $0x3] sm:$0x1] %v343_v30 }
  0xab   : > { %311 = vst [vmem:[%s1317_s7 + $0x12] sm:$0x1] %v308_v33 }
  0xac   : > { %350 = vst [vmem:[%s1317_s7 + $0x13] sm:$0x1] %v347_v34 }
  0xae   : > { %v305_v37 = vpop.f32.mrf.mxu2  ;;  %v344_v38 = vpop.f32.mrf.mxu3 }
  0xaf   : > { %v381_v39 = vpop.f32.mrf.mxu0  ;;  %v420_v40 = vpop.f32.mrf.mxu1 }
  0xb0   : > { %v382_v41 = vadd.f32 %v1133_v35, %v381_v39  ;;  %v421_v42 = vadd.f32 %v1134_v36, %v420_v40 }
  0xb2   : > { %v386_v43 = vrot.slane %v382_v41, 1  ;;  %388 = vst [vmem:[%s1317_s7 + $0x4] sm:$0x1] %v382_v41  ;;  %v425_v44 = vrot.slane %v421_v42, 1 }
  0xb3   : > { %427 = vst [vmem:[%s1317_s7 + $0x5] sm:$0x1] %v421_v42 }
  0xb4   : > { %389 = vst [vmem:[%s1317_s7 + $0x14] sm:$0x1] %v386_v43 }
  0xb5   : > { %428 = vst [vmem:[%s1317_s7 + $0x15] sm:$0x1] %v425_v44 }
  0xb6   : > { %v459_v47 = vpop.f32.mrf.mxu2  ;;  %v498_v48 = vpop.f32.mrf.mxu3 }
  0xb7   : > { %v460_v49 = vadd.f32 %v1135_v45, %v459_v47  ;;  %v499_v50 = vadd.f32 %v1136_v46, %v498_v48  ;;  %v383_v51 = vpop.f32.mrf.mxu0  ;;  %v422_v52 = vpop.f32.mrf.mxu1 }
  0xb9   : > { %v464_v53 = vrot.slane %v460_v49, 1  ;;  %466 = vst [vmem:[%s1317_s7 + $0x6] sm:$0x1] %v460_v49  ;;  %v503_v54 = vrot.slane %v499_v50, 1 }
  0xba   : > { %505 = vst [vmem:[%s1317_s7 + $0x7] sm:$0x1] %v499_v50 }
  0xbb   : > { %467 = vst [vmem:[%s1317_s7 + $0x16] sm:$0x1] %v464_v53 }
  0xbc   : > { %506 = vst [vmem:[%s1317_s7 + $0x17] sm:$0x1] %v503_v54 }
  0xbe   : > { %v461_v57 = vpop.f32.mrf.mxu2  ;;  %v500_v58 = vpop.f32.mrf.mxu3 }
  0xbf   : > { %v537_v59 = vpop.f32.mrf.mxu0  ;;  %v576_v60 = vpop.f32.mrf.mxu1 }
  0xc0   : > { %v538_v61 = vadd.f32 %v1137_v55, %v537_v59  ;;  %v577_v62 = vadd.f32 %v1138_v56, %v576_v60 }
  0xc1   : > { %v863_v33 = vld [vmem:[%s1317_s7] sm:$0xff] (%p1211_p4) }
  0xc2   : > { %v542_v63 = vrot.slane %v538_v61, 1  ;;  %544 = vst [vmem:[%s1317_s7 + $0x8] sm:$0x1] %v538_v61  ;;  %v581_v0 = vrot.slane %v577_v62, 1 }
  0xc3   : > { %583 = vst [vmem:[%s1317_s7 + $0x9] sm:$0x1] %v577_v62  ;;  %v867_v35 = vld [vmem:[%s1317_s7 + $0x10] sm:$0xff] (%p1211_p4) }
  0xc4   : > { %545 = vst [vmem:[%s1317_s7 + $0x18] sm:$0x1] %v542_v63 }
  0xc5   : > { %584 = vst [vmem:[%s1317_s7 + $0x19] sm:$0x1] %v581_v0 }
  0xc6   : > { %v615_v3 = vpop.f32.mrf.mxu2  ;;  %v654_v4 = vpop.f32.mrf.mxu3  ;;  %864 = vst [vmem:[%s828_s10] sm:$0xff] (%p1211_p4), %v863_v33 }
  0xc7   : > { %v616_v5 = vadd.f32 %v1139_v1, %v615_v3  ;;  %v655_v6 = vadd.f32 %v1140_v2, %v654_v4  ;;  %v539_v7 = vpop.f32.mrf.mxu0  ;;  %v578_v8 = vpop.f32.mrf.mxu1  ;;  %868 = vst [vmem:[%s828_s10 + $0x40] sm:$0xff] (%p1211_p4), %v867_v35 }
  0xc9   : > { %v620_v9 = vrot.slane %v616_v5, 1  ;;  %622 = vst [vmem:[%s1317_s7 + $0xa] sm:$0x1] %v616_v5  ;;  %v659_v10 = vrot.slane %v655_v6, 1 }
  0xca   : > { %661 = vst [vmem:[%s1317_s7 + $0xb] sm:$0x1] %v655_v6 }
  0xcb   : > { %623 = vst [vmem:[%s1317_s7 + $0x1a] sm:$0x1] %v620_v9 }
  0xcc   : > { %662 = vst [vmem:[%s1317_s7 + $0x1b] sm:$0x1] %v659_v10 }
  0xce   : > { %v617_v13 = vpop.f32.mrf.mxu2  ;;  %v656_v14 = vpop.f32.mrf.mxu3 }
  0xcf   : > { %v693_v15 = vpop.f32.mrf.mxu0  ;;  %v732_v16 = vpop.f32.mrf.mxu1 }
  0xd0   : > { %v694_v17 = vadd.f32 %v1141_v11, %v693_v15  ;;  %v733_v18 = vadd.f32 %v1142_v12, %v732_v16 }
  0xd2   : > { %v698_v19 = vrot.slane %v694_v17, 1  ;;  %700 = vst [vmem:[%s1317_s7 + $0xc] sm:$0x1] %v694_v17  ;;  %v737_v20 = vrot.slane %v733_v18, 1 }
  0xd3   : > { %739 = vst [vmem:[%s1317_s7 + $0xd] sm:$0x1] %v733_v18 }
  0xd4   : > { %701 = vst [vmem:[%s1317_s7 + $0x1c] sm:$0x1] %v698_v19 }
  0xd5   : > { %740 = vst [vmem:[%s1317_s7 + $0x1d] sm:$0x1] %v737_v20 }
  0xd6   : > { %v771_v23 = vpop.f32.mrf.mxu2  ;;  %v810_v24 = vpop.f32.mrf.mxu3 }
  0xd7   : > { %v772_v25 = vadd.f32 %v1143_v21, %v771_v23  ;;  %v811_v26 = vadd.f32 %v1144_v22, %v810_v24  ;;  %v695_v27 = vpop.f32.mrf.mxu0  ;;  %v734_v28 = vpop.f32.mrf.mxu1 }
  0xd9   : > { %v776_v29 = vrot.slane %v772_v25, 1  ;;  %778 = vst [vmem:[%s1317_s7 + $0xe] sm:$0x1] %v772_v25  ;;  %v815_v30 = vrot.slane %v811_v26, 1 }
  0xda   : > { %817 = vst [vmem:[%s1317_s7 + $0xf] sm:$0x1] %v811_v26  ;;  %825 = sbr.rel (!%p1211_p4) target bundleno = 229 (0xe5), region = 36 }
  0xdb   : > { %779 = vst [vmem:[%s1317_s7 + $0x1e] sm:$0x1] %v776_v29 }
  0xdc   : > { %818 = vst [vmem:[%s1317_s7 + $0x1f] sm:$0x1] %v815_v30 }
  0xde   : > { %v773_v31 = vpop.f32.mrf.mxu2  ;;  %v812_v32 = vpop.f32.mrf.mxu3 }
  0xe1   : > { %v865_v34 = vld [vmem:[%s1317_s7 + $0x8] sm:$0xff] }
  0xe2   : > { %866 = vst [vmem:[%s828_s10 + $0x8] sm:$0xff] %v865_v34 }
  0xe3   : > { %v869_v36 = vld [vmem:[%s1317_s7 + $0x18] sm:$0xff] }
  0xe4   : > { %870 = vst [vmem:[%s828_s10 + $0x48] sm:$0xff] %v869_v36 }
  0xe5 PF: > { %p10_p8 = scmp.ge.s32.totalorder %s1202_s16, 6   ;;  %s1390_s12 = smov %s1163_s13 }
  0xe6   : > { %s1391_s13 = smov %s1209_s19  ;;  %s1392_s14 = smov %s1202_s16 }
  0xe7   :  { %12 = sbr.rel (!%p10_p8) target bundleno = 2 (0x2), region = 133 }

// kernel: gen_coder_decoder_forward.3
= control target key start
LH: loop header
LB: loop body
LE: loop exit
PB: predicated region body
PF: predicated region fallthrough
CT: control target
= control target key end

     0   :  { %s2220_s20 = smov 0   ;;  %s2822_s0 = inlined_call_operand.vmem [shape: f32[2,64,128], index: 0, kind: input, shape index: {}]   ;;  %s2823_s1 = inlined_call_operand.vmem [shape: f32[5,32,64], index: 1, kind: input, shape index: {}]   ;;  %s2824_s2 = inlined_call_operand.vmem [shape: f32[32,1], index: 2, kind: input, shape index: {}]   ;;  %s2825_s3 = inlined_call_operand.vmem [shape: f32[3,2,32], index: 3, kind: input, shape index: {}]   ;;  %s2826_s4 = inlined_call_operand.<no memory space> [shape: f32[1,1], index: 4, kind: input, shape index: {}]   ;;  %s2827_s5 = inlined_call_operand.vmem [shape: f32[2,2,128], index: 5, kind: output, shape index: {}]  }
   0x1   :  { %v10_v0 = vstv %s2826_s4 }
   0x2   :  { %11 = vst [vmem:[#allocation3] sm:$0x1] %v10_v0 }
   0x3 LB: > { %s1804_s21 = sadd.s32 4294967295, %s2177_s20   ;;  %p1808_p0 = scmp.ge.s32.totalorder %s2177_s20, 1  ;;  %s2177_s20 = sphi %s2220_s20, %s17_s20  }
   0x4   : > { %p189_p1 = scmp.lt.s32.totalorder %s2177_s20, 3 }
   0x6   : > { %p190_p2 = pnand %p1808_p0, %p189_p1 }
   0x7   : > { %p216_p3 = scmp.lt.s32.totalorder (!%p190_p2), %s1804_s21, 1  ;;  %s2179_s25 = smov (!%p190_p2), 127  }
   0x8   : > { %193 = sbr.rel (%p190_p2) target bundleno = 936 (0x3a8), region = 40  ;;  %s2180_s26 = smov (!%p190_p2), 126  }
   0x9   : > { %s2181_s14 = smov (!%p190_p2), 125   ;;  %s2182_s15 = smov (!%p190_p2), 2  }
   0xa   : > { %s2183_s23 = smov (!%p190_p2), 3   ;;  %s2185_s19 = smov (!%p190_p2), 1  }
   0xd   : > { %s2829_s21 = smov (!%p216_p3, %s1804_s21), 1  ;;  %v2301_v13 = vld [vmem:[%s2823_s1] sm:$0xff]  ;;  %vm242_vm0 = vcmask 523264   ;;  %v2336_v16 = vld [vmem:[%s2823_s1 + $0x8] sm:$0xff]  ;;  %v2373_v19 = vld [vmem:[%s2823_s1 + $0x10] sm:$0xff]  ;;  %v2186_v33 = vmov 0  }
   0xe   : > { %s1966_s4 = sshll.u32 %s2829_s21, 6  ;;  %v2306_v14 = vld [vmem:[%s2823_s1 + $0x20] sm:$0xff]  ;;  %v2341_v17 = vld [vmem:[%s2823_s1 + $0x28] sm:$0xff]  ;;  %v2378_v20 = vld [vmem:[%s2823_s1 + $0x30] sm:$0xff]  ;;  %2123 = vset.pattern.permute.xlu2 %v2186_v33  ;;  %2124 = vset.pattern.permute.xlu1 %v2186_v33  ;;  %vm750_vm1 = vcmask 7168   ;;  %vm995_vm2 = vcmask 15368  }
   0xf   : > { %s220_s24 = scalar_lea.vmem %s2822_s0, %s1966_s4  ;;  %v2312_v15 = vld [vmem:[%s2823_s1 + $0x60] sm:$0xff]  ;;  %v2348_v18 = vld [vmem:[%s2823_s1 + $0x68] sm:$0xff]  ;;  %v2385_v21 = vld [vmem:[%s2823_s1 + $0x70] sm:$0xff]  ;;  %2155 = vset.pattern.permute.xlu0 %v2186_v33  ;;  %vm1312_vm3 = vcmask 1040368   ;;  %vm1484_vm4 = vcmask 1048568   ;;  %vm1496_vm5 = vcmask 261120  }
  0x10   : > { %v2234_v1 = vld [vmem:[%s220_s24 + $0x38] sm:$0xff]  ;;  %v2236_v2 = vld [vmem:[%s220_s24 + $0x30] sm:$0xff]  ;;  %v2253_v7 = vld [vmem:[%s220_s24 + $0x28] sm:$0xff]  ;;  %vm1661_vm6 = vcmask 1024   ;;  %vm1749_vm7 = vcmask 1042424  }
  0x11   : > { %v2238_v3 = vld [vmem:[%s220_s24 + $0x10] sm:$0xff]  ;;  %263 = vmatpush.msra.mxu0 %v2234_v1  ;;  %358 = vmatpush.msra.mxu2 %v2234_v1  ;;  %v2244_v4 = vpack.i.bf16 %v2236_v2, %v2234_v1  ;;  %v2246_v5 = vld [vmem:[%s220_s24 + $0x18] sm:$0xff]  ;;  %v2260_v8 = vld [vmem:[%s220_s24 + $0x20] sm:$0xff] }
  0x12   : > { %416 = vmatpush.msra.mxu3 %v2234_v1  ;;  %v2251_v6 = vpack.i.bf16 %v2238_v3, %v2246_v5  ;;  %v2267_v9 = vld [vmem:[%s220_s24] sm:$0xff]  ;;  %v2269_v10 = vld [vmem:[%s220_s24 + $0x8] sm:$0xff]  ;;  %v2274_v11 = vpack.i.bf16 %v2260_v8, %v2253_v7  ;;  %312 = vmatpush.msra.mxu1 %v2234_v1  ;;  %s2184_s24 = smov 4   ;;  %v2407_v22 = vld [vmem:[%s2823_s1 + $0x18] sm:$0xff] }
  0x13   : > { %1984 = vrot.lane.b32.xlu0 %v2244_v4, %s2179_s25  ;;  %264 = vmatpush.msra.mxu0 %v2236_v2  ;;  %v2283_v12 = vpack.i.bf16 %v2267_v9, %v2269_v10  ;;  %v2412_v23 = vld [vmem:[%s2823_s1 + $0x38] sm:$0xff]  ;;  %v2432_v25 = vld [vmem:[%s2823_s1 + $0x40] sm:$0xff]  ;;  %v2455_v27 = vld [vmem:[%s2823_s1 + $0x88] sm:$0xff] }
  0x14   : > { %359 = vmatpush.msra.mxu2 %v2236_v2  ;;  %417 = vmatpush.msra.mxu3 %v2236_v2  ;;  %v2417_v24 = vld [vmem:[%s2823_s1 + $0x78] sm:$0xff]  ;;  %v2440_v26 = vld [vmem:[%s2823_s1 + $0x80] sm:$0xff]  ;;  %v2467_v28 = vld [vmem:[%s2823_s1 + $0x90] sm:$0xff] }
  0x15   : > { %1994 = vrot.lane.b32.xlu1 %v2251_v6, %s2179_s25  ;;  %265 = vmatpush.msra.mxu0 %v2253_v7  ;;  %v2475_v29 = vld [vmem:[%s2823_s1 + $0x48] sm:$0xff]  ;;  %v2488_v30 = vld [vmem:[%s2823_s1 + $0x98] sm:$0xff]  ;;  %v2499_v31 = vld [vmem:[%s2823_s1 + $0x50] sm:$0xff] }
  0x16   : > { %360 = vmatpush.msra.mxu2 %v2253_v7  ;;  %418 = vmatpush.msra.mxu3 %v2253_v7  ;;  %v2504_v32 = vld [vmem:[%s2824_s2 + $0x18] sm:$0xff]  ;;  %v2519_v38 = vld [vmem:[%s2824_s2 + $0x10] sm:$0xff]  ;;  %v2529_v39 = vld [vmem:[%s2824_s2 + $0x8] sm:$0xff] }
  0x17   : > { %266 = vmatpush.msra.mxu0 %v2260_v8  ;;  %2004 = vrot.lane.b32.xlu2 %v2244_v4, %s2180_s26  ;;  %v2514_v37 = vld [vmem:[%s2823_s1 + $0x58] sm:$0xff]  ;;  %v2535_v43 = vld [vmem:[%s2824_s2] sm:$0xff] }
  0x18   : > { %361 = vmatpush.msra.mxu2 %v2260_v8  ;;  %419 = vmatpush.msra.mxu3 %v2260_v8 }
  0x19   : > { %267 = vmatpush.msra.mxu0 %v2246_v5  ;;  %313 = vmatpush.msra.mxu1 %v2236_v2 }
  0x1a   : > { %362 = vmatpush.msra.mxu2 %v2246_v5  ;;  %420 = vmatpush.msra.mxu3 %v2246_v5 }
  0x1b   : > { %1989 = vrot.lane.b32.xlu0 %v2274_v11, %s2179_s25  ;;  %268 = vmatpush.msra.mxu0 %v2238_v3 }
  0x1c   : > { %363 = vmatpush.msra.mxu2 %v2238_v3  ;;  %421 = vmatpush.msra.mxu3 %v2238_v3 }
  0x1d   : > { %1999 = vrot.lane.b32.xlu1 %v2283_v12, %s2179_s25  ;;  %269 = vmatpush.msra.mxu0 %v2269_v10 }
  0x1e   : > { %364 = vmatpush.msra.mxu2 %v2269_v10  ;;  %422 = vmatpush.msra.mxu3 %v2269_v10 }
  0x1f   : > { %270 = vmatpush.msra.mxu0 %v2267_v9  ;;  %2009 = vrot.lane.b32.xlu2 %v2274_v11, %s2180_s26 }
  0x20   : > { %365 = vmatpush.msra.mxu2 %v2267_v9  ;;  %423 = vmatpush.msra.mxu3 %v2267_v9 }
  0x21   : > { %1816 = vmatmul.msk.f32.vlgmr.msra.gmra.mxu0 %vm242_vm0, %v2301_v13  ;;  %1828 = vmatmul.msk.f32.vlgmr.msra.gmra.mxu2 %vm242_vm0, %v2306_v14 }
  0x22   : > { %1836 = vmatmul.msk.f32.vlgmr.msra.gmra.mxu3 %vm242_vm0, %v2312_v15  ;;  %474 = vmatpush.msrb.mxu0 %v2234_v1 }
  0x23   : > { %2014 = vrot.lane.b32.xlu0 %v2251_v6, %s2180_s26  ;;  %644 = vmatpush.msrb.mxu2 %v2234_v1 }
  0x24   : > { %475 = vmatpush.msrb.mxu0 %v2236_v2  ;;  %314 = vmatpush.msra.mxu1 %v2253_v7 }
  0x25   : > { %2019 = vrot.lane.b32.xlu1 %v2283_v12, %s2180_s26  ;;  %645 = vmatpush.msrb.mxu2 %v2236_v2 }
  0x26   : > { %476 = vmatpush.msrb.mxu0 %v2253_v7  ;;  %315 = vmatpush.msra.mxu1 %v2260_v8 }
  0x27   : > { %2024 = vrot.lane.b32.xlu2 %v2244_v4, %s2181_s14  ;;  %646 = vmatpush.msrb.mxu2 %v2253_v7 }
  0x28   : > { %477 = vmatpush.msrb.mxu0 %v2260_v8  ;;  %316 = vmatpush.msra.mxu1 %v2246_v5 }
  0x29   : > { %1817 = vmatmul.msk.f32.gmra.mxu0 %vm242_vm0, %v2336_v16  ;;  %1829 = vmatmul.msk.f32.gmra.mxu2 %vm242_vm0, %v2341_v17 }
  0x2a   : > { %1837 = vmatmul.msk.f32.gmra.mxu3 %vm242_vm0, %v2348_v18  ;;  %478 = vmatpush.msrb.mxu0 %v2246_v5 }
  0x2b   : > { %2029 = vrot.lane.b32.xlu0 %v2244_v4, %s2182_s15  ;;  %647 = vmatpush.msrb.mxu2 %v2260_v8 }
  0x2c   : > { %479 = vmatpush.msrb.mxu0 %v2238_v3  ;;  %317 = vmatpush.msra.mxu1 %v2238_v3 }
  0x2d   : > { %2034 = vrot.lane.b32.xlu1 %v2274_v11, %s2181_s14  ;;  %648 = vmatpush.msrb.mxu2 %v2246_v5 }
  0x2e   : > { %480 = vmatpush.msrb.mxu0 %v2269_v10  ;;  %318 = vmatpush.msra.mxu1 %v2269_v10 }
  0x2f   : > { %2039 = vrot.lane.b32.xlu2 %v2244_v4, %s2183_s23  ;;  %649 = vmatpush.msrb.mxu2 %v2238_v3 }
  0x30   : > { %481 = vmatpush.msrb.mxu0 %v2267_v9  ;;  %319 = vmatpush.msra.mxu1 %v2267_v9 }
  0x31   : > { %1818 = vmatmul.msk.f32.gmra.mxu0 %vm242_vm0, %v2373_v19  ;;  %1830 = vmatmul.msk.f32.gmra.mxu2 %vm242_vm0, %v2378_v20 }
  0x32   : > { %1838 = vmatmul.msk.f32.gmra.mxu3 %vm242_vm0, %v2385_v21  ;;  %650 = vmatpush.msrb.mxu2 %v2269_v10 }
  0x33   : > { %2044 = vrot.lane.b32.xlu0 %v2244_v4, %s2184_s24  ;;  %1820 = vmatmul.msk.f32.vlgmr.msra.gmra.mxu1 %vm242_vm0, %v2432_v25 }
  0x34   : > { %651 = vmatpush.msrb.mxu2 %v2267_v9 }
  0x35   : > { %2049 = vrot.lane.b32.xlu1 %v2274_v11, %s2182_s15 }
  0x37   : > { %2054 = vrot.lane.b32.xlu2 %v2251_v6, %s2181_s14 }
  0x39   : > { %1819 = vmatmul.msk.f32.gmra.mxu0 %vm242_vm0, %v2407_v22  ;;  %1831 = vmatmul.msk.f32.gmra.mxu2 %vm242_vm0, %v2412_v23 }
  0x3a   : > { %1839 = vmatmul.msk.f32.gmra.mxu3 %vm242_vm0, %v2417_v24 }
  0x3b   : > { %2059 = vrot.lane.b32.xlu0 %v2274_v11, %s2183_s23  ;;  %1821 = vmatmul.msk.f32.gmra.mxu1 %vm242_vm0, %v2475_v29 }
  0x3d   : > { %2064 = vrot.lane.b32.xlu1 %v2274_v11, %s2184_s24 }
  0x3f   : > { %2069 = vrot.lane.b32.xlu2 %v2251_v6, %s2182_s15 }
  0x41   : > { %1844 = vmatmul.msk.f32.vlgmr.msrb.gmra.mxu0 %vm242_vm0, %v2440_v26  ;;  %1860 = vmatmul.msk.f32.vlgmr.msrb.gmra.mxu2 %vm242_vm0, %v2432_v25 }
  0x43   : > { %2074 = vrot.lane.b32.xlu0 %v2283_v12, %s2181_s14  ;;  %1822 = vmatmul.msk.f32.gmra.mxu1 %vm242_vm0, %v2499_v31 }
  0x45   : > { %2079 = vrot.lane.b32.xlu1 %v2251_v6, %s2183_s23 }
  0x47   : > { %2084 = vrot.lane.b32.xlu2 %v2251_v6, %s2184_s24 }
  0x49   : > { %1845 = vmatmul.msk.f32.gmra.mxu0 %vm242_vm0, %v2455_v27  ;;  %1861 = vmatmul.msk.f32.gmra.mxu2 %vm242_vm0, %v2475_v29 }
  0x4b   : > { %2089 = vrot.lane.b32.xlu0 %v2283_v12, %s2182_s15  ;;  %1823 = vmatmul.msk.f32.gmra.mxu1 %vm242_vm0, %v2514_v37 }
  0x4d   : > { %2094 = vrot.lane.b32.xlu1 %v2283_v12, %s2183_s23 }
  0x4f   : > { %2099 = vrot.lane.b32.xlu2 %v2283_v12, %s2184_s24 }
  0x51   : > { %1846 = vmatmul.msk.f32.gmra.mxu0 %vm242_vm0, %v2467_v28  ;;  %1862 = vmatmul.msk.f32.gmra.mxu2 %vm242_vm0, %v2499_v31 }
  0x53   : > { %2104 = vrot.lane.b32.xlu0 %v2244_v4, %s2185_s19 }
  0x55   : > { %2109 = vrot.lane.b32.xlu1 %v2274_v11, %s2185_s19 }
  0x57   : > { %2114 = vrot.lane.b32.xlu2 %v2251_v6, %s2185_s19 }
  0x59   : > { %1847 = vmatmul.msk.f32.gmra.mxu0 %vm242_vm0, %v2488_v30  ;;  %1863 = vmatmul.msk.f32.gmra.mxu2 %vm242_vm0, %v2514_v37 }
  0x5b   : > { %2119 = vrot.lane.b32.xlu0 %v2283_v12, %s2185_s19 }
  0x5d   : > { %518 = vperm.xlu1 %2124, %v2529_v39  }
  0x5f   : > { %528 = vperm.xlu2 %2123, %v2504_v32  }
  0x67   : > { %523 = vperm.xlu2 %2123, %v2519_v38  }
  0x6f   : > { %513 = vperm.xlu2 %2123, %v2535_v43  }
  0x71   : > { %v2005_v34 = vpop.permute.xlu2 %2004 }
  0x72   : > { %v2006_v35 = vunpack.i.l.bf16 %v2005_v34  ;;  %v2007_v36 = vunpack.i.h.bf16 %v2005_v34 }
  0x74   : > { %713 = vmatpush.msrb.mxu3 %v2006_v35  ;;  %869 = vmatpush.msra.mxu2 %v2006_v35 }
  0x76   : > { %714 = vmatpush.msrb.mxu3 %v2007_v36  ;;  %870 = vmatpush.msra.mxu2 %v2007_v36 }
  0x79   : > { %v2010_v40 = vpop.permute.xlu2 %2009 }
  0x7a   : > { %v2011_v41 = vunpack.i.l.bf16 %v2010_v40  ;;  %v2012_v42 = vunpack.i.h.bf16 %v2010_v40 }
  0x7c   : > { %715 = vmatpush.msrb.mxu3 %v2011_v41  ;;  %871 = vmatpush.msra.mxu2 %v2011_v41 }
  0x7e   : > { %716 = vmatpush.msrb.mxu3 %v2012_v42  ;;  %872 = vmatpush.msra.mxu2 %v2012_v42 }
  0x81   : > { %v2538_v44 = vpop.permute.xlu2 %2024 }
  0x82   : > { %v2026_v6 = vunpack.i.l.bf16 %v2538_v44  ;;  %v2027_v34 = vunpack.i.h.bf16 %v2538_v44 }
  0x85   : > { %v1985_v45 = vpop.permute.xlu0 %1984 }
  0x86   : > { %v1986_v46 = vunpack.i.l.bf16 %v1985_v45  ;;  %v1987_v48 = vunpack.i.h.bf16 %v1985_v45 }
  0x87   : > { %v1995_v47 = vpop.permute.xlu1 %1994 }
  0x88   : > { %603 = vmatpush.msrb.mxu1 %v1986_v46  ;;  %783 = vmatpush.msra.mxu0 %v1986_v46  ;;  %v1996_v54 = vunpack.i.l.bf16 %v1995_v47  ;;  %v1997_v55 = vunpack.i.h.bf16 %v1995_v47 }
  0x89   : > { %v2540_v49 = vpop.permute.xlu2 %2039 }
  0x8a   : > { %604 = vmatpush.msrb.mxu1 %v1987_v48  ;;  %784 = vmatpush.msra.mxu0 %v1987_v48  ;;  %v2041_v0 = vunpack.i.l.bf16 %v2540_v49  ;;  %v2042_v11 = vunpack.i.h.bf16 %v2540_v49 }
  0x8d   : > { %v1990_v50 = vpop.permute.xlu0 %1989 }
  0x8e   : > { %v1991_v51 = vunpack.i.l.bf16 %v1990_v50  ;;  %v1992_v53 = vunpack.i.h.bf16 %v1990_v50 }
  0x8f   : > { %v2000_v52 = vpop.permute.xlu1 %1999 }
  0x90   : > { %605 = vmatpush.msrb.mxu1 %v1991_v51  ;;  %785 = vmatpush.msra.mxu0 %v1991_v51  ;;  %v2001_v56 = vunpack.i.l.bf16 %v2000_v52  ;;  %v2002_v62 = vunpack.i.h.bf16 %v2000_v52 }
  0x91   : > { %v2542_v58 = vpop.permute.xlu2 %2054 }
  0x92   : > { %606 = vmatpush.msrb.mxu1 %v1992_v53  ;;  %786 = vmatpush.msra.mxu0 %v1992_v53  ;;  %v2056_v45 = vunpack.i.l.bf16 %v2542_v58  ;;  %v2057_v48 = vunpack.i.h.bf16 %v2542_v58 }
  0x94   : > { %607 = vmatpush.msrb.mxu1 %v1996_v54  ;;  %787 = vmatpush.msra.mxu0 %v1996_v54 }
  0x95   : > { %v2015_v57 = vpop.permute.xlu0 %2014 }
  0x96   : > { %608 = vmatpush.msrb.mxu1 %v1997_v55  ;;  %788 = vmatpush.msra.mxu0 %v1997_v55  ;;  %v2016_v59 = vunpack.i.l.bf16 %v2015_v57  ;;  %v2017_v60 = vunpack.i.h.bf16 %v2015_v57 }
  0x97   : > { %v2020_v61 = vpop.permute.xlu1 %2019 }
  0x98   : > { %609 = vmatpush.msrb.mxu1 %v2001_v56  ;;  %717 = vmatpush.msrb.mxu3 %v2016_v59  ;;  %v2021_v63 = vunpack.i.l.bf16 %v2020_v61  ;;  %v2022_v4 = vunpack.i.h.bf16 %v2020_v61 }
  0x99   : > { %789 = vmatpush.msra.mxu0 %v2001_v56  ;;  %873 = vmatpush.msra.mxu2 %v2016_v59 }
  0x9a   : > { %610 = vmatpush.msrb.mxu1 %v2002_v62  ;;  %718 = vmatpush.msrb.mxu3 %v2017_v60 }
  0x9b   : > { %790 = vmatpush.msra.mxu0 %v2002_v62  ;;  %1856 = vmatmul.msk.f32.vlgmr.msrb.gmra.mxu1 %vm242_vm0, %v2312_v15 }
  0x9c   : > { %719 = vmatpush.msrb.mxu3 %v2021_v63  ;;  %824 = vmatpush.msra.mxu1 %v2234_v1  ;;  %v2559_v1 = vpop.permute.xlu2 %2069 }
  0x9d   : > { %v2550_v12 = vpop.permute.xlu0 %2029  ;;  %874 = vmatpush.msra.mxu2 %v2017_v60  ;;  %1052 = vmatpush.msrb.mxu0 %v2041_v0  ;;  %v2071_v57 = vunpack.i.l.bf16 %v2559_v1 }
  0x9e   : > { %v272_v33 = vpop.f32.mrf.mxu0  ;;  %720 = vmatpush.msrb.mxu3 %v2022_v4  ;;  %825 = vmatpush.msra.mxu1 %v2236_v2  ;;  %v2031_v36 = vunpack.i.l.bf16 %v2550_v12  ;;  %v2032_v2 = vunpack.i.h.bf16 %v2550_v12 }
  0x9f   : > { %v2035_v35 = vpop.permute.xlu1 %2034  ;;  %284 = vrot.lane.b32.xlu1 %v272_v33, %s2182_s15  ;;  %1868 = vmatmul.msk.f32.vlgmr.msrb.gmra.mxu3 %vm242_vm0, %v2440_v26 }
  0xa0   : > { %826 = vmatpush.msra.mxu1 %v2253_v7  ;;  %875 = vmatpush.msra.mxu2 %v2021_v63  ;;  %v2036_v40 = vunpack.i.l.bf16 %v2035_v35  ;;  %v2037_v7 = vunpack.i.h.bf16 %v2035_v35 }
  0xa1   : > { %942 = vmatpush.msra.mxu3 %v2026_v6  ;;  %1053 = vmatpush.msrb.mxu0 %v2042_v11 }
  0xa2   : > { %827 = vmatpush.msra.mxu1 %v2260_v8  ;;  %876 = vmatpush.msra.mxu2 %v2022_v4 }
  0xa3   : > { %1857 = vmatmul.msk.f32.gmra.mxu1 %vm242_vm0, %v2348_v18  ;;  %943 = vmatpush.msra.mxu3 %v2027_v34 }
  0xa4   : > { %v367_v41 = vpop.f32.mrf.mxu2  ;;  %828 = vmatpush.msra.mxu1 %v2246_v5  ;;  %1186 = vmatpush.msrb.mxu2 %v2031_v36 }
  0xa5   : > { %v425_v42 = vpop.f32.mrf.mxu3  ;;  %379 = vrot.lane.b32.xlu2 %v367_v41, %s2185_s19  ;;  %v2045_v44 = vpop.permute.xlu0 %2044  ;;  %944 = vmatpush.msra.mxu3 %v2036_v40 }
  0xa6   : > { %437 = vrot.lane.b32.xlu0 %v425_v42, %s2179_s25  ;;  %v275_v8 = vpop.f32.mrf.mxu0  ;;  %829 = vmatpush.msra.mxu1 %v2238_v3  ;;  %v2046_v47 = vunpack.i.l.bf16 %v2045_v44  ;;  %v2085_v3 = vpop.permute.xlu2 %2084  ;;  %v2047_v50 = vunpack.i.h.bf16 %v2045_v44 }
  0xa7   : > { %v2576_v46 = vpop.permute.xlu1 %2049  ;;  %286 = vrot.lane.b32.xlu1 %v275_v8, %s2182_s15  ;;  %1869 = vmatmul.msk.f32.gmra.mxu3 %vm242_vm0, %v2455_v27  ;;  %v2086_v60 = vunpack.i.l.bf16 %v2085_v3  ;;  %v2087_v62 = vunpack.i.h.bf16 %v2085_v3  ;;  %v2072_v8 = vunpack.i.h.bf16 %v2559_v1 }
  0xa8   : > { %v2051_v5 = vunpack.i.l.bf16 %v2576_v46  ;;  %830 = vmatpush.msra.mxu1 %v2269_v10  ;;  %1187 = vmatpush.msrb.mxu2 %v2032_v2  ;;  %v2052_v51 = vunpack.i.h.bf16 %v2576_v46 }
  0xa9   : > { %945 = vmatpush.msra.mxu3 %v2037_v7  ;;  %1892 = vmatmul.msk.f32.vlgmr.msra.gmra.mxu2 %vm242_vm0, %v2312_v15 }
  0xaa   : > { %831 = vmatpush.msra.mxu1 %v2267_v9  ;;  %1880 = vmatmul.msk.f32.vlgmr.msra.gmra.mxu0 %vm242_vm0, %v2432_v25 }
  0xab   : > { %1858 = vmatmul.msk.f32.gmra.mxu1 %vm242_vm0, %v2385_v21  ;;  %946 = vmatpush.msra.mxu3 %v2056_v45 }
  0xac   : > { %v370_v10 = vpop.f32.mrf.mxu2  ;;  %1117 = vmatpush.msrb.mxu1 %v2046_v47  ;;  %1188 = vmatpush.msrb.mxu2 %v2051_v5 }
  0xad   : > { %v428_v52 = vpop.f32.mrf.mxu3  ;;  %381 = vrot.lane.b32.xlu2 %v370_v10, %s2185_s19  ;;  %v2597_v53 = vpop.permute.xlu0 %2059  ;;  %947 = vmatpush.msra.mxu3 %v2057_v48 }
  0xae   : > { %439 = vrot.lane.b32.xlu0 %v428_v52, %s2179_s25  ;;  %v278_v9 = vpop.f32.mrf.mxu0  ;;  %1118 = vmatpush.msrb.mxu1 %v2047_v50  ;;  %v2062_v54 = vunpack.i.h.bf16 %v2597_v53  ;;  %v2061_v55 = vunpack.i.l.bf16 %v2597_v53  ;;  %v2100_v61 = vpop.permute.xlu2 %2099 }
  0xaf   : > { %v2065_v56 = vpop.permute.xlu1 %2064  ;;  %1870 = vmatmul.msk.f32.gmra.mxu3 %vm242_vm0, %v2467_v28  ;;  %1189 = vmatpush.msrb.mxu2 %v2052_v51  ;;  %v2101_v33 = vunpack.i.l.bf16 %v2100_v61  ;;  %v2102_v7 = vunpack.i.h.bf16 %v2100_v61 }
  0xb0   : > { %v2067_v58 = vunpack.i.h.bf16 %v2065_v56  ;;  %v2066_v59 = vunpack.i.l.bf16 %v2065_v56  ;;  %1054 = vmatpush.msrb.mxu0 %v2061_v55 }
  0xb1   : > { %1893 = vmatmul.msk.f32.gmra.mxu2 %vm242_vm0, %v2348_v18 }
  0xb2   : > { %1119 = vmatpush.msrb.mxu1 %v2066_v59  ;;  %1055 = vmatpush.msrb.mxu0 %v2062_v54 }
  0xb3   : > { %1859 = vmatmul.msk.f32.gmra.mxu1 %vm242_vm0, %v2417_v24  ;;  %1881 = vmatmul.msk.f32.gmra.mxu0 %vm242_vm0, %v2475_v29 }
  0xb4   : > { %1120 = vmatpush.msrb.mxu1 %v2067_v58  ;;  %v373_v63 = vpop.f32.mrf.mxu2  ;;  %1190 = vmatpush.msrb.mxu2 %v2071_v57 }
  0xb5   : > { %v431_v4 = vpop.f32.mrf.mxu3  ;;  %288 = vrot.lane.b32.xlu2 %v278_v9, %s2182_s15  ;;  %v2075_v6 = vpop.permute.xlu0 %2074 }
  0xb6   : > { %441 = vrot.lane.b32.xlu0 %v431_v4, %s2179_s25  ;;  %1121 = vmatpush.msrb.mxu1 %v2086_v60  ;;  %v281_v34 = vpop.f32.mrf.mxu0  ;;  %v2076_v35 = vunpack.i.l.bf16 %v2075_v6  ;;  %v2077_v41 = vunpack.i.h.bf16 %v2075_v6  ;;  %v2115_v12 = vpop.permute.xlu2 %2114 }
  0xb7   : > { %v2080_v40 = vpop.permute.xlu1 %2079  ;;  %290 = vrot.lane.b32.xlu1 %v281_v34, %s2182_s15  ;;  %1871 = vmatmul.msk.f32.gmra.mxu3 %vm242_vm0, %v2488_v30  ;;  %v2116_v46 = vunpack.i.l.bf16 %v2115_v12 }
  0xb8   : > { %v2082_v42 = vunpack.i.h.bf16 %v2080_v40  ;;  %v2081_v44 = vunpack.i.l.bf16 %v2080_v40  ;;  %1122 = vmatpush.msrb.mxu1 %v2087_v62  ;;  %948 = vmatpush.msra.mxu3 %v2076_v35 }
  0xb9   : > { %1894 = vmatmul.msk.f32.gmra.mxu2 %vm242_vm0, %v2385_v21 }
  0xba   : > { %1123 = vmatpush.msrb.mxu1 %v2101_v33  ;;  %1056 = vmatpush.msrb.mxu0 %v2081_v44 }
  0xbb   : > { %1884 = vmatmul.msk.f32.vlgmr.msra.gmra.mxu1 %vm242_vm0, %v2306_v14  ;;  %949 = vmatpush.msra.mxu3 %v2077_v41 }
  0xbc   : > { %1124 = vmatpush.msrb.mxu1 %v2102_v7  ;;  %v376_v45 = vpop.f32.mrf.mxu2  ;;  %1057 = vmatpush.msrb.mxu0 %v2082_v42 }
  0xbd   : > { %383 = vrot.lane.b32.xlu2 %v373_v63, %s2185_s19  ;;  %v2090_v47 = vpop.permute.xlu0 %2089  ;;  %1191 = vmatpush.msrb.mxu2 %v2072_v8 }
  0xbe   : > { %1386 = vmatpush.msra.mxu1 %v2041_v0  ;;  %385 = vrot.lane.b32.xlu0 %v376_v45, %s2185_s19  ;;  %v483_v48 = vpop.f32.mrf.mxu0  ;;  %v2092_v3 = vunpack.i.h.bf16 %v2090_v47  ;;  %v2091_v50 = vunpack.i.l.bf16 %v2090_v47  ;;  %v434_v0 = vpop.f32.mrf.mxu3 }
  0xbf   : > { %v2095_v10 = vpop.permute.xlu1 %2094  ;;  %1900 = vmatmul.msk.f32.vlgmr.msra.gmra.mxu3 %vm242_vm0, %v2440_v26  ;;  %1882 = vmatmul.msk.f32.gmra.mxu0 %vm242_vm0, %v2499_v31 }
  0xc0   : > { %1387 = vmatpush.msra.mxu1 %v2042_v11  ;;  %v2097_v52 = vunpack.i.h.bf16 %v2095_v10  ;;  %v2096_v9 = vunpack.i.l.bf16 %v2095_v10  ;;  %1192 = vmatpush.msrb.mxu2 %v2091_v50 }
  0xc1   : > { %1895 = vmatmul.msk.f32.gmra.mxu2 %vm242_vm0, %v2417_v24 }
  0xc2   : > { %1388 = vmatpush.msra.mxu1 %v2061_v55  ;;  %1058 = vmatpush.msrb.mxu0 %v2096_v9 }
  0xc3   : > { %1193 = vmatpush.msrb.mxu2 %v2092_v3  ;;  %1885 = vmatmul.msk.f32.gmra.mxu1 %vm242_vm0, %v2341_v17 }
  0xc4   : > { %1059 = vmatpush.msrb.mxu0 %v2097_v52  ;;  %1389 = vmatpush.msra.mxu1 %v2062_v54 }
  0xc5   : > { %v2105_v26 = vpop.permute.xlu0 %2104 }
  0xc6   : > { %1345 = vmatpush.msra.mxu0 %v2031_v36  ;;  %443 = vrot.lane.b32.xlu0 %v434_v0, %s2179_s25  ;;  %v486_v49 = vpop.f32.mrf.mxu0  ;;  %v2106_v11 = vunpack.i.l.bf16 %v2105_v26  ;;  %v2107_v53 = vunpack.i.h.bf16 %v2105_v26 }
  0xc7   : > { %1390 = vmatpush.msra.mxu1 %v2081_v44  ;;  %497 = vrot.lane.b32.xlu1 %v486_v49, %s2180_s26  ;;  %v2110_v55 = vpop.permute.xlu1 %2109 }
  0xc8   : > { %1346 = vmatpush.msra.mxu0 %v2032_v2  ;;  %1901 = vmatmul.msk.f32.gmra.mxu3 %vm242_vm0, %v2455_v27  ;;  %v2111_v36 = vunpack.i.l.bf16 %v2110_v55  ;;  %v2112_v27 = vunpack.i.h.bf16 %v2110_v55 }
  0xc9   : > { %1391 = vmatpush.msra.mxu1 %v2082_v42  ;;  %1259 = vmatpush.msrb.mxu3 %v2106_v11 }
  0xca   : > { %1347 = vmatpush.msra.mxu0 %v2051_v5  ;;  %1920 = vmatmul.msk.f32.vlgmr.msrb.gmra.mxu2 %vm242_vm0, %v2432_v25  ;;  %v2117_v5 = vunpack.i.h.bf16 %v2115_v12 }
  0xcb   : > { %1883 = vmatmul.msk.f32.gmra.mxu0 %vm242_vm0, %v2514_v37  ;;  %1392 = vmatpush.msra.mxu1 %v2096_v9 }
  0xcc   : > { %1348 = vmatpush.msra.mxu0 %v2052_v51  ;;  %1886 = vmatmul.msk.f32.gmra.mxu1 %vm242_vm0, %v2378_v20 }
  0xcd   : > { %1260 = vmatpush.msrb.mxu3 %v2107_v53  ;;  %1393 = vmatpush.msra.mxu1 %v2097_v52  ;;  %v2120_v1 = vpop.permute.xlu0 %2119 }
  0xce   : > { %1349 = vmatpush.msra.mxu0 %v2071_v57  ;;  %495 = vrot.lane.b32.xlu0 %v483_v48, %s2180_s26  ;;  %v489_v2 = vpop.f32.mrf.mxu0  ;;  %v2121_v51 = vunpack.i.l.bf16 %v2120_v1  ;;  %v2122_v54 = vunpack.i.h.bf16 %v2120_v1 }
  0xcf   : > { %1261 = vmatpush.msrb.mxu3 %v2111_v36  ;;  %499 = vrot.lane.b32.xlu1 %v489_v2, %s2180_s26 }
  0xd0   : > { %1350 = vmatpush.msra.mxu0 %v2072_v8  ;;  %1902 = vmatmul.msk.f32.gmra.mxu3 %vm242_vm0, %v2467_v28 }
  0xd1   : > { %1431 = vmatpush.msra.mxu2 %v2106_v11  ;;  %1262 = vmatpush.msrb.mxu3 %v2112_v27 }
  0xd2   : > { %1351 = vmatpush.msra.mxu0 %v2091_v50  ;;  %1921 = vmatmul.msk.f32.gmra.mxu2 %vm242_vm0, %v2475_v29 }
  0xd3   : > { %1908 = vmatmul.msk.f32.vlgmr.msrb.gmra.mxu0 %vm242_vm0, %v2306_v14  ;;  %1432 = vmatpush.msra.mxu2 %v2107_v53 }
  0xd4   : > { %1887 = vmatmul.msk.f32.gmra.mxu1 %vm242_vm0, %v2412_v23  ;;  %1352 = vmatpush.msra.mxu0 %v2092_v3 }
  0xd5   : > { %1263 = vmatpush.msrb.mxu3 %v2116_v46  ;;  %1433 = vmatpush.msra.mxu2 %v2111_v36 }
  0xd6   : > { %v492_v28 = vpop.f32.mrf.mxu0 }
  0xd7   : > { %1264 = vmatpush.msrb.mxu3 %v2117_v5  ;;  %501 = vrot.lane.b32.xlu1 %v492_v28, %s2180_s26 }
  0xd8   : > { %1434 = vmatpush.msra.mxu2 %v2112_v27  ;;  %1903 = vmatmul.msk.f32.gmra.mxu3 %vm242_vm0, %v2488_v30 }
  0xd9   : > { %1265 = vmatpush.msrb.mxu3 %v2121_v51 }
  0xda   : > { %1435 = vmatpush.msra.mxu2 %v2116_v46 }
  0xdb   : > { %1909 = vmatmul.msk.f32.gmra.mxu0 %vm242_vm0, %v2341_v17  ;;  %1266 = vmatpush.msrb.mxu3 %v2122_v54 }
  0xdc   : > { %1912 = vmatmul.msk.f32.vlgmr.msrb.gmra.mxu1 %vm242_vm0, %v2301_v13  ;;  %1922 = vmatmul.msk.f32.gmra.mxu2 %vm242_vm0, %v2499_v31 }
  0xdd   : > { %1436 = vmatpush.msra.mxu2 %v2117_v5 }
  0xdf   : > { %1437 = vmatpush.msra.mxu2 %v2121_v51 }
  0xe0   : > { %1928 = vmatmul.msk.f32.vlgmr.msrb.gmra.mxu3 %vm242_vm0, %v2312_v15  ;;  %v321_v15 = vpop.f32.mrf.mxu1 }
  0xe1   : > { %1438 = vmatpush.msra.mxu2 %v2122_v54 }
  0xe3   : > { %1910 = vmatmul.msk.f32.gmra.mxu0 %vm242_vm0, %v2378_v20 }
  0xe4   : > { %1913 = vmatmul.msk.f32.gmra.mxu1 %vm242_vm0, %v2336_v16  ;;  %1923 = vmatmul.msk.f32.gmra.mxu2 %vm242_vm0, %v2514_v37 }
  0xe8   : > { %1929 = vmatmul.msk.f32.gmra.mxu3 %vm242_vm0, %v2348_v18  ;;  %v324_v18 = vpop.f32.mrf.mxu1 }
  0xeb   : > { %1911 = vmatmul.msk.f32.gmra.mxu0 %vm242_vm0, %v2412_v23 }
  0xec   : > { %1914 = vmatmul.msk.f32.gmra.mxu1 %vm242_vm0, %v2373_v19  ;;  %1948 = vmatmul.msk.f32.vlgmr.msra.gmra.mxu2 %vm242_vm0, %v2432_v25 }
  0xf0   : > { %1930 = vmatmul.msk.f32.gmra.mxu3 %vm242_vm0, %v2385_v21  ;;  %v327_v21 = vpop.f32.mrf.mxu1 }
  0xf3   : > { %1936 = vmatmul.msk.f32.vlgmr.msra.gmra.mxu0 %vm242_vm0, %v2306_v14  ;;  %v2714_v14 = vpop.permute.xlu2 %528 }
  0xf4   : > { %1915 = vmatmul.msk.f32.gmra.mxu1 %vm242_vm0, %v2407_v22  ;;  %1949 = vmatmul.msk.f32.gmra.mxu2 %vm242_vm0, %v2475_v29 }
  0xf8   : > { %1931 = vmatmul.msk.f32.gmra.mxu3 %vm242_vm0, %v2417_v24  ;;  %v653_v24 = vpop.f32.mrf.mxu2 }
  0xfb   : > { %1937 = vmatmul.msk.f32.gmra.mxu0 %vm242_vm0, %v2341_v17  ;;  %v2722_v17 = vpop.permute.xlu2 %523 }
  0xfc   : > { %1940 = vmatmul.msk.f32.vlgmr.msra.gmra.mxu1 %vm242_vm0, %v2301_v13  ;;  %1950 = vmatmul.msk.f32.gmra.mxu2 %vm242_vm0, %v2499_v31  ;;  %v2728_v13 = vpop.f32.mrf.mxu1 }
 0x100   : > { %v656_v25 = vpop.f32.mrf.mxu2 }
 0x103   : > { %1938 = vmatmul.msk.f32.gmra.mxu0 %vm242_vm0, %v2378_v20  ;;  %v2730_v20 = vpop.permute.xlu2 %513 }
 0x104   : > { %1941 = vmatmul.msk.f32.gmra.mxu1 %vm242_vm0, %v2336_v16  ;;  %1951 = vmatmul.msk.f32.gmra.mxu2 %vm242_vm0, %v2514_v37  ;;  %v519_v16 = vpop.permute.xlu1 %518 }
 0x108   : > { %v659_v31 = vpop.f32.mrf.mxu2 }
 0x10b   : > { %1939 = vmatmul.msk.f32.gmra.mxu0 %vm242_vm0, %v2412_v23  ;;  %v380_v37 = vpop.permute.xlu2 %379 }
 0x10c   : > { %1942 = vmatmul.msk.f32.gmra.mxu1 %vm242_vm0, %v2373_v19 }
 0x110   : > { %v662_v59 = vpop.f32.mrf.mxu2 }
 0x111   : > { %v285_v56 = vpop.permute.xlu1 %284 }
 0x112   : > { %v322_v50 = vadd.f32 %v321_v15, %v285_v56 }
 0x113   : > { %v382_v60 = vpop.permute.xlu2 %381 }
 0x114   : > { %1943 = vmatmul.msk.f32.gmra.mxu1 %vm242_vm0, %v2407_v22  ;;  %v387_v53 = vadd.f32 %v380_v37, %v322_v50 }
 0x118   : > { %v438_v29 = vpop.permute.xlu0 %437  ;;  %v612_v30 = vpop.f32.mrf.mxu1 }
 0x119   : > { %v287_v62 = vpop.permute.xlu1 %286  ;;  %v654_v36 = vadd.f32 %v653_v24, %v612_v30  ;;  %v445_v1 = vadd.f32 %v438_v29, %v387_v53 }
 0x11a   : > { %v325_v40 = vadd.f32 %v324_v18, %v287_v62 }
 0x11b   : > { %v289_v22 = vpop.permute.xlu2 %288 }
 0x11c   : > { %v388_v8 = vadd.f32 %v382_v60, %v325_v40  ;;  %v328_v49 = vadd.f32 %v327_v21, %v289_v22 }
 0x120   : > { %v440_v57 = vpop.permute.xlu0 %439  ;;  %v615_v58 = vpop.f32.mrf.mxu1 }
 0x121   : > { %v657_v44 = vadd.f32 %v656_v25, %v615_v58  ;;  %v446_v47 = vadd.f32 %v440_v57, %v388_v8 }
 0x122   : > { %v722_v23 = vpop.f32.mrf.mxu3 }
 0x123   : > { %v384_v0 = vpop.permute.xlu2 %383  ;;  %v734_v51 = vadd.f32 %v722_v23, %v654_v36 }
 0x124   : > { %v389_v2 = vadd.f32 %v384_v0, %v328_v49 }
 0x125   : > { %v742_v37 = vadd.f32 %v734_v51, %v2535_v43 }
 0x127   : > { %v792_v63 = vpop.f32.mrf.mxu0  ;;  %v746_v22 = vmax.f32 %v742_v37, 0.0 }
 0x128   : > { %v442_v19 = vpop.permute.xlu0 %441  ;;  %v618_v61 = vpop.f32.mrf.mxu1 }
 0x129   : > { %v291_v35 = vpop.permute.xlu1 %290  ;;  %v660_v46 = vadd.f32 %v659_v31, %v618_v61  ;;  %v447_v54 = vadd.f32 %v442_v19, %v389_v2 }
 0x12a   : > { %v725_v4 = vpop.f32.mrf.mxu3  ;;  %v331_v29 = vadd.f32 %v2728_v13, %v291_v35 }
 0x12b   : > { %v735_v45 = vadd.f32 %v725_v4, %v657_v44 }
 0x12c   : > { %v878_v6 = vpop.f32.mrf.mxu2 }
 0x12d   : > { %v743_v26 = vadd.f32 %v735_v45, %v2529_v39 }
 0x12f   : > { %v747_v28 = vmax.f32 %v743_v26, 0.0 }
 0x130   : > { %v386_v33 = vpop.permute.xlu0 %385  ;;  %v621_v34 = vpop.f32.mrf.mxu1 }
 0x131   : > { %v795_v7 = vpop.f32.mrf.mxu0  ;;  %v663_v60 = vadd.f32 %v662_v59, %v621_v34 }
 0x132   : > { %v728_v41 = vpop.f32.mrf.mxu3 }
 0x133   : > { %v736_v15 = vadd.f32 %v728_v41, %v660_v46 }
 0x134   : > { %v2734_v42 = vpop.f32.mrf.mxu2 }
 0x135   : > { %v744_v58 = vadd.f32 %v736_v15, %v2519_v38 }
 0x137   : > { %v748_v44 = vmax.f32 %v744_v58, 0.0 }
 0x138   : > { %v444_v48 = vpop.permute.xlu0 %443  ;;  %v833_v3 = vpop.f32.mrf.mxu1 }
 0x139   : > { %v498_v10 = vpop.permute.xlu1 %497  ;;  %v834_v27 = vadd.f32 %v833_v3, %v792_v63  ;;  %v390_v63 = vadd.f32 %v386_v33, %v331_v29 }
 0x13a   : > { %v504_v52 = vadd.f32 %v498_v10, %v446_v47  ;;  %v731_v9 = vpop.f32.mrf.mxu3 }
 0x13b   : > { %v890_v21 = vadd.f32 %v878_v6, %v834_v27  ;;  %v737_v40 = vadd.f32 %v731_v9, %v663_v60  ;;  %v448_v8 = vadd.f32 %v444_v48, %v390_v63 }
 0x13c   : > { %v532_v11 = vadd.f32 %v519_v16, %v504_v52  ;;  %v2737_v55 = vpop.f32.mrf.mxu2  ;;  %v798_v12 = vpop.f32.mrf.mxu0 }
 0x13d   : > { %v745_v33 = vadd.f32 %v737_v40, %v2504_v32 }
 0x13e   : > { %v536_v5 = vmax.f32 %v532_v11, 0.0 }
 0x13f   : > { %v749_v50 = vmax.f32 %v745_v33, 0.0 }
 0x140   : > { %540 = vst [vmem:[#allocation2 + $0x8] sm:$0xff] %v536_v5  ;;  %v496_v18 = vpop.permute.xlu0 %495  ;;  %v836_v25 = vpop.f32.mrf.mxu1 }
 0x141   : > { %v503_v16 = vadd.f32 %v496_v18, %v445_v1  ;;  %v500_v56 = vpop.permute.xlu1 %499  ;;  %752 = vst.msk [vmem:[#allocation2 + $0x8] sm:$0xff] %vm750_vm1, %v747_v28  ;;  %v837_v6 = vadd.f32 %v836_v25, %v795_v7 }
 0x142   : > { %v505_v24 = vadd.f32 %v500_v56, %v447_v54  ;;  %v951_v30 = vpop.f32.mrf.mxu3 }
 0x143   : > { %v531_v31 = vadd.f32 %v2730_v20, %v503_v16  ;;  %v963_v57 = vadd.f32 %v951_v30, %v890_v21 }
 0x144   : > { %v533_v23 = vadd.f32 %v2722_v17, %v505_v24  ;;  %v887_v62 = vpop.f32.mrf.mxu2  ;;  %v891_v17 = vadd.f32 %v2734_v42, %v837_v6 }
 0x145   : > { %v535_v19 = vmax.f32 %v531_v31, 0.0  ;;  %v971_v61 = vadd.f32 %v963_v57, %v2535_v43 }
 0x146   : > { %v537_v4 = vmax.f32 %v533_v23, 0.0 }
 0x147   : > { %539 = vst [vmem:[#allocation2] sm:$0xff] %v535_v19  ;;  %v975_v41 = vmax.f32 %v971_v61, 0.0 }
 0x148   : > { %v801_v20 = vpop.f32.mrf.mxu0  ;;  %541 = vst [vmem:[#allocation2 + $0x10] sm:$0xff] %v537_v4 }
 0x149   : > { %v839_v13 = vpop.f32.mrf.mxu1  ;;  %v502_v35 = vpop.permute.xlu1 %501  ;;  %983 = vrot.lane.b32.xlu2 %v975_v41, %s2185_s19  ;;  %751 = vst.msk [vmem:[#allocation2] sm:$0xff] %vm750_vm1, %v746_v22 }
 0x14a   : > { %v506_v59 = vadd.f32 %v502_v35, %v448_v8  ;;  %753 = vst.msk [vmem:[#allocation2 + $0x10] sm:$0xff] %vm750_vm1, %v748_v44  ;;  %v840_v48 = vadd.f32 %v839_v13, %v798_v12 }
 0x14b   : > { %v954_v34 = vpop.f32.mrf.mxu3 }
 0x14c   : > { %v534_v7 = vadd.f32 %v2714_v14, %v506_v59  ;;  %v964_v45 = vadd.f32 %v954_v34, %v891_v17  ;;  %v892_v42 = vadd.f32 %v2737_v55, %v840_v48 }
 0x14d   : > { %v1195_v52 = vpop.f32.mrf.mxu2 }
 0x14e   : > { %v538_v47 = vmax.f32 %v534_v7, 0.0  ;;  %v972_v3 = vadd.f32 %v964_v45, %v2529_v39 }
 0x150   : > { %v1061_v10 = vpop.f32.mrf.mxu0  ;;  %542 = vst [vmem:[#allocation2 + $0x18] sm:$0xff] %v538_v47  ;;  %v976_v9 = vmax.f32 %v972_v3, 0.0 }
 0x151   : > { %v842_v0 = vpop.f32.mrf.mxu1  ;;  %754 = vst.msk [vmem:[#allocation2 + $0x18] sm:$0xff] %vm750_vm1, %v749_v50 }
 0x152   : > { %985 = vrot.lane.b32.xlu2 %v976_v9, %s2185_s19  ;;  %v843_v14 = vadd.f32 %v842_v0, %v801_v20 }
 0x153   : > { %v957_v26 = vpop.f32.mrf.mxu3 }
 0x154   : > { %v965_v49 = vadd.f32 %v957_v26, %v892_v42  ;;  %v893_v2 = vadd.f32 %v887_v62, %v843_v14 }
 0x155   : > { %v1198_v36 = vpop.f32.mrf.mxu2 }
 0x156   : > { %v973_v11 = vadd.f32 %v965_v49, %v2519_v38 }
 0x158   : > { %v1064_v53 = vpop.f32.mrf.mxu0  ;;  %v977_v27 = vmax.f32 %v973_v11, 0.0 }
 0x159   : > { %v1126_v12 = vpop.f32.mrf.mxu1 }
 0x15a   : > { %987 = vrot.lane.b32.xlu2 %v977_v27, %s2185_s19  ;;  %v1127_v40 = vadd.f32 %v1126_v12, %v1061_v10 }
 0x15b   : > { %v960_v46 = vpop.f32.mrf.mxu3 }
 0x15c   : > { %v966_v5 = vadd.f32 %v960_v46, %v893_v2  ;;  %v1207_v59 = vadd.f32 %v1195_v52, %v1127_v40 }
 0x15e   : > { %v974_v1 = vadd.f32 %v966_v5, %v2504_v32 }
 0x15f   : > { %v1201_v55 = vpop.f32.mrf.mxu2 }
 0x160   : > { %v1067_v51 = vpop.f32.mrf.mxu0  ;;  %v978_v28 = vmax.f32 %v974_v1, 0.0 }
 0x161   : > { %v1129_v54 = vpop.f32.mrf.mxu1 }
 0x162   : > { %989 = vrot.lane.b32.xlu0 %v978_v28, %s2185_s19  ;;  %v1130_v18 = vadd.f32 %v1129_v54, %v1064_v53 }
 0x163   : > { %v1268_v15 = vpop.f32.mrf.mxu3 }
 0x164   : > { %v1208_v56 = vadd.f32 %v1198_v36, %v1130_v18  ;;  %v1280_v7 = vadd.f32 %v1268_v15, %v1207_v59 }
 0x166   : > { %v1288_v48 = vadd.f32 %v1280_v7, %v2535_v43 }
 0x167   : > { %v1204_v16 = vpop.f32.mrf.mxu2 }
 0x168   : > { %v1070_v25 = vpop.f32.mrf.mxu0  ;;  %v1292_v10 = vmax.f32 %v1288_v48, 0.0  ;;  %v1958_v48 = vld [vmem:[%s2825_s3 + $0x4] sm:$0x3] }
 0x169   : > { %v1132_v21 = vpop.f32.mrf.mxu1 }
 0x16a   : > { %v1133_v37 = vadd.f32 %v1132_v21, %v1067_v51 }
 0x16b   : > { %v1271_v24 = vpop.f32.mrf.mxu3 }
 0x16c   : > { %v1281_v30 = vadd.f32 %v1271_v24, %v1208_v56  ;;  %v1209_v23 = vadd.f32 %v1201_v55, %v1133_v37 }
 0x16e   : > { %v1289_v31 = vadd.f32 %v1281_v30, %v2529_v39 }
 0x16f   : > { %v1440_v60 = vpop.f32.mrf.mxu2 }
 0x170   : > { %v1293_v57 = vmax.f32 %v1289_v31, 0.0  ;;  %v1354_v58 = vpop.f32.mrf.mxu0 }
 0x171   : > { %v1135_v29 = vpop.f32.mrf.mxu1 }
 0x172   : > { %1302 = vrot.lane.b32.xlu1 %v1293_v57, %s2180_s26  ;;  %v1136_v62 = vadd.f32 %v1135_v29, %v1070_v25  ;;  %v1495_v29 = vld [vmem:[%s2825_s3] sm:$0x3] }
 0x173   : > { %v1274_v19 = vpop.f32.mrf.mxu3 }
 0x174   : > { %v1282_v61 = vadd.f32 %v1274_v19, %v1209_v23  ;;  %v1210_v41 = vadd.f32 %v1204_v16, %v1136_v62  ;;  %v1952_v23 = vld [vmem:[%s2825_s3 + $0x2] sm:$0x3] }
 0x176   : > { %v1290_v63 = vadd.f32 %v1282_v61, %v2519_v38 }
 0x177   : > { %v1443_v35 = vpop.f32.mrf.mxu2 }
 0x178   : > { %v1294_v4 = vmax.f32 %v1290_v63, 0.0  ;;  %v1357_v20 = vpop.f32.mrf.mxu0 }
 0x179   : > { %v1395_v6 = vpop.f32.mrf.mxu1 }
 0x17a   : > { %v1396_v22 = vadd.f32 %v1395_v6, %v1354_v58  ;;  %1304 = vrot.lane.b32.xlu1 %v1294_v4, %s2180_s26  ;;  %v2156_v58 = vld [vmem:[#allocation3] ss:$0 sm:$0xff] }
 0x17b   : > { %v1277_v44 = vpop.f32.mrf.mxu3 }
 0x17c   : > { %v1452_v8 = vadd.f32 %v1440_v60, %v1396_v22  ;;  %v1283_v13 = vadd.f32 %v1277_v44, %v1210_v41  ;;  %v1955_v60 = vld [vmem:[%s2825_s3 + $0x4] sm:$0x3] }
 0x17e   : > { %v1460_v17 = vadd.f32 %v1452_v8, %v2535_v43  ;;  %v1291_v33 = vadd.f32 %v1283_v13, %v2504_v32  ;;  %v1459_v43 = vld [vmem:[%s2824_s2 + $0x18] sm:$0xff]  ;;  %v1961_v8 = vld [vmem:[%s2825_s3 + $0x2] sm:$0x3] }
 0x17f   : > { %v1446_v50 = vpop.f32.mrf.mxu2 }
 0x180   : > { %v1464_v34 = vmax.f32 %v1460_v17, 0.0  ;;  %v1295_v45 = vmax.f32 %v1291_v33, 0.0  ;;  %v1360_v3 = vpop.f32.mrf.mxu0  ;;  %v1957_v17 = vld [vmem:[%s2825_s3 + $0x2] sm:$0x3] }
 0x181   : > { %v1398_v47 = vpop.f32.mrf.mxu1 }
 0x182   : > { %1472 = vrot.lane.b32.xlu2 %v1464_v34, %s2179_s25  ;;  %1306 = vrot.lane.b32.xlu1 %v1295_v45, %s2180_s26  ;;  %v1399_v53 = vadd.f32 %v1398_v47, %v1357_v20 }
 0x184   : > { %v1453_v12 = vadd.f32 %v1443_v35, %v1399_v53  ;;  %v1663_v35 = vld [vmem:[%s2825_s3] sm:$0x3] }
 0x187   : > { %v1449_v14 = vpop.f32.mrf.mxu2 }
 0x188   : > { %v1363_v42 = vpop.f32.mrf.mxu0 }
 0x189   : > { %v1401_v9 = vpop.f32.mrf.mxu1 }
 0x18a   : > { %v1402_v0 = vadd.f32 %v1401_v9, %v1360_v3  ;;  %1300 = vrot.lane.b32.xlu1 %v1292_v10, %s2180_s26 }
 0x18c   : > { %v1454_v52 = vadd.f32 %v1446_v50, %v1402_v0  ;;  %v2157_v0 = vld [vmem:[#allocation3] ss:$0 sm:$0xff] }
 0x18e   : > { %v1462_v32 = vadd.f32 %v1454_v52, %v2519_v38  ;;  %v1461_v38 = vadd.f32 %v1453_v12, %v2529_v39 }
 0x190   : > { %v1466_v26 = vmax.f32 %v1462_v32, 0.0  ;;  %v1465_v46 = vmax.f32 %v1461_v38, 0.0 }
 0x191   : > { %v1404_v49 = vpop.f32.mrf.mxu1 }
 0x192   : > { %v1405_v11 = vadd.f32 %v1404_v49, %v1363_v42  ;;  %1476 = vrot.lane.b32.xlu0 %v1466_v26, %s2179_s25 }
 0x194   : > { %v1455_v36 = vadd.f32 %v1449_v14, %v1405_v11 }
 0x196   : > { %v1463_v27 = vadd.f32 %v1459_v43, %v1455_v36  ;;  %v2158_v43 = vld [vmem:[#allocation3] ss:$0 sm:$0xff] }
 0x198   : > { %v1467_v2 = vmax.f32 %v1463_v27, 0.0 }
 0x19a   : > { %1478 = vrot.lane.b32.xlu0 %v1467_v2, %s2179_s25 }
 0x1a2   : > { %1474 = vrot.lane.b32.xlu0 %v1465_v46, %s2179_s25 }
 0x1a3   : > { %v984_v5 = vpop.permute.xlu2 %983 }
 0x1a4   : > { %996 = vst.msk [vmem:[#allocation2] sm:$0xff] %vm995_vm2, %v984_v5 }
 0x1ac   : > { %v986_v1 = vpop.permute.xlu2 %985 }
 0x1ad   : > { %997 = vst.msk [vmem:[#allocation2 + $0x8] sm:$0xff] %vm995_vm2, %v986_v1 }
 0x1b4   : > { %v988_v51 = vpop.permute.xlu2 %987 }
 0x1b5   : > { %998 = vst.msk [vmem:[#allocation2 + $0x10] sm:$0xff] %vm995_vm2, %v988_v51 }
 0x1d4   : > { %v990_v55 = vpop.permute.xlu0 %989 }
 0x1d5   : > { %999 = vst.msk [vmem:[#allocation2 + $0x18] sm:$0xff] %vm995_vm2, %v990_v55 }
 0x1dc   : > { %v1473_v18 = vpop.permute.xlu2 %1472 }
 0x1e4   : > { %v1303_v28 = vpop.permute.xlu1 %1302 }
 0x1e5   : > { %1314 = vst.msk [vmem:[#allocation2 + $0x8] sm:$0xff] %vm1312_vm3, %v1303_v28 }
 0x1ec   : > { %v1305_v54 = vpop.permute.xlu1 %1304 }
 0x1ed   : > { %1315 = vst.msk [vmem:[#allocation2 + $0x10] sm:$0xff] %vm1312_vm3, %v1305_v54 }
 0x1f4   : > { %v1307_v15 = vpop.permute.xlu1 %1306 }
 0x1f5   : > { %1316 = vst.msk [vmem:[#allocation2 + $0x18] sm:$0xff] %vm1312_vm3, %v1307_v15 }
 0x1fc   : > { %v1301_v39 = vpop.permute.xlu1 %1300 }
 0x1fd   : > { %1313 = vst.msk [vmem:[#allocation2] sm:$0xff] %vm1312_vm3, %v1301_v39 }
 0x1fe   : > { %1485 = vst.msk [vmem:[#allocation2] sm:$0xff] %vm1484_vm4, %v1473_v18 }
 0x204   : > { %v1477_v25 = vpop.permute.xlu0 %1476 }
 0x205   : > { %1487 = vst.msk [vmem:[#allocation2 + $0x10] sm:$0xff] %vm1484_vm4, %v1477_v25  ;;  %v1489_v31 = vld [vmem:[#allocation2] sm:$0xff] }
 0x20c   : > { %v1479_v21 = vpop.permute.xlu0 %1478  ;;  %v1491_v24 = vld [vmem:[#allocation2 + $0x10] sm:$0xff] }
 0x20d   : > { %1488 = vst.msk [vmem:[#allocation2 + $0x18] sm:$0xff] %vm1484_vm4, %v1479_v21 }
 0x214   : > { %v1475_v16 = vpop.permute.xlu0 %1474  ;;  %v1492_v56 = vld [vmem:[#allocation2 + $0x18] sm:$0xff] }
 0x215   : > { %1486 = vst.msk [vmem:[#allocation2 + $0x8] sm:$0xff] %vm1484_vm4, %v1475_v16  ;;  %1512 = vmatpush.msra.mxu3 %v1492_v56  ;;  %1643 = vmatpush.msrb.mxu0 %v1492_v56  ;;  %v2135_v30 = vpack.i.bf16 %v1491_v24, %v1492_v56 }
 0x217   : > { %2136 = vrot.lane.b32.xlu2 %v2135_v30, %s2185_s19  ;;  %2126 = vrot.lane.b32.xlu0 %v2135_v30, %s2182_s15 }
 0x218   : > { %1513 = vmatpush.msra.mxu3 %v1491_v24  ;;  %1644 = vmatpush.msrb.mxu0 %v1491_v24 }
 0x21c   : > { %v1490_v37 = vld [vmem:[#allocation2 + $0x8] sm:$0xff] }
 0x21d   : > { %1514 = vmatpush.msra.mxu3 %v1490_v37  ;;  %1645 = vmatpush.msrb.mxu0 %v1490_v37  ;;  %v2150_v57 = vpack.i.bf16 %v1489_v31, %v1490_v37 }
 0x21f   : > { %2151 = vrot.lane.b32.xlu2 %v2150_v57, %s2179_s25  ;;  %2141 = vrot.lane.b32.xlu0 %v2150_v57, %s2185_s19 }
 0x220   : > { %2131 = vrot.lane.b32.xlu1 %v2150_v57, %s2182_s15  ;;  %1515 = vmatpush.msra.mxu3 %v1489_v31 }
 0x221   : > { %1646 = vmatpush.msrb.mxu0 %v1489_v31  ;;  %1953 = vmatmul.msk.f32.vlgmr.msra.gmra.mxu3 %vm1496_vm5, %v1495_v29 }
 0x222   : > { %1537 = vmatpush.msrb.mxu3 %v1492_v56  ;;  %1960 = vmatmul.msk.f32.vlgmr.msrb.gmra.mxu0 %vm1496_vm5, %v1957_v17 }
 0x224   : > { %1538 = vmatpush.msrb.mxu3 %v1491_v24 }
 0x226   : > { %1539 = vmatpush.msrb.mxu3 %v1490_v37 }
 0x227   : > { %1577 = vperm.xlu2 %2123, %v2156_v58  }
 0x228   : > { %1540 = vmatpush.msrb.mxu3 %v1489_v31  ;;  %2146 = vrot.lane.b32.xlu1 %v2135_v30, %s2179_s25 }
 0x229   : > { %1954 = vmatmul.msk.f32.vlgmr.msrb.gmra.mxu3 %vm1496_vm5, %v1952_v23 }
 0x22a   : > { %1562 = vmatpush.msra.mxu3 %v1492_v56 }
 0x22c   : > { %1563 = vmatpush.msra.mxu3 %v1491_v24 }
 0x22e   : > { %1564 = vmatpush.msra.mxu3 %v1490_v37 }
 0x230   : > { %1565 = vmatpush.msra.mxu3 %v1489_v31 }
 0x231   : > { %1956 = vmatmul.msk.f32.vlgmr.msra.gmra.mxu3 %vm1496_vm5, %v1955_v60 }
 0x271   : > { %v2137_v19 = vpop.permute.xlu2 %2136 }
 0x272   : > { %v2138_v61 = vunpack.i.l.bf16 %v2137_v19  ;;  %v2139_v62 = vunpack.i.h.bf16 %v2137_v19 }
 0x274   : > { %1692 = vmatpush.msrb.mxu1 %v2138_v61 }
 0x276   : > { %1693 = vmatpush.msrb.mxu1 %v2139_v62 }
 0x279   : > { %v2152_v34 = vpop.permute.xlu2 %2151 }
 0x27a   : > { %v2153_v45 = vunpack.i.l.bf16 %v2152_v34  ;;  %v2154_v47 = vunpack.i.h.bf16 %v2152_v34 }
 0x281   : > { %v1578_v46 = vpop.permute.xlu2 %1577 }
 0x289   : > { %v2127_v63 = vpop.permute.xlu0 %2126 }
 0x28a   : > { %v2128_v4 = vunpack.i.l.bf16 %v2127_v63  ;;  %v2129_v6 = vunpack.i.h.bf16 %v2127_v63 }
 0x28c   : > { %1727 = vmatpush.msrb.mxu2 %v2128_v4 }
 0x28e   : > { %1728 = vmatpush.msrb.mxu2 %v2129_v6 }
 0x291   : > { %v2142_v22 = vpop.permute.xlu0 %2141 }
 0x292   : > { %v2132_v40 = vpop.permute.xlu1 %2131  ;;  %v2143_v41 = vunpack.i.l.bf16 %v2142_v22  ;;  %v2144_v44 = vunpack.i.h.bf16 %v2142_v22 }
 0x293   : > { %v2133_v20 = vunpack.i.l.bf16 %v2132_v40  ;;  %v2134_v13 = vunpack.i.h.bf16 %v2132_v40 }
 0x294   : > { %1694 = vmatpush.msrb.mxu1 %v2143_v41 }
 0x295   : > { %1729 = vmatpush.msrb.mxu2 %v2133_v20 }
 0x296   : > { %1695 = vmatpush.msrb.mxu1 %v2144_v44 }
 0x297   : > { %1730 = vmatpush.msrb.mxu2 %v2134_v13  ;;  %1962 = vmatmul.msk.f32.vlgmr.msrb.gmra.mxu1 %vm1496_vm5, %v1961_v8 }
 0x298   : > { %1963 = vmatmul.msk.f32.vlgmr.msrb.gmra.mxu2 %vm1496_vm5, %v1663_v35 }
 0x29a   : > { %v2147_v59 = vpop.permute.xlu1 %2146 }
 0x29b   : > { %v2148_v33 = vunpack.i.l.bf16 %v2147_v59  ;;  %v2149_v7 = vunpack.i.h.bf16 %v2147_v59 }
 0x29d   : > { %1620 = vmatpush.msrb.mxu3 %v2148_v33 }
 0x29f   : > { %1621 = vmatpush.msrb.mxu3 %v2149_v7  ;;  %v1648_v11 = vpop.f32.mrf.mxu0 }
 0x2a1   : > { %1622 = vmatpush.msrb.mxu3 %v2153_v45 }
 0x2a3   : > { %1623 = vmatpush.msrb.mxu3 %v2154_v47 }
 0x2a4   : > { %v1517_v3 = vpop.f32.mrf.mxu3  ;;  %1959 = vmatmul.msk.f32.vlgmr.msrb.gmra.mxu3 %vm1496_vm5, %v1958_v48 }
 0x2a5   : > { %1520 = vrot.lane.b32.xlu0 %v1517_v3, %s2185_s19  ;;  %s1811_s19 = sshll.u32 %s2829_s21, 1 }
 0x2a6   : > { %s224_s8 = scalar_lea.vmem %s2827_s5, %s1811_s19 }
 0x2ac   : > { %v1542_v50 = vpop.f32.mrf.mxu3 }
 0x2b4   : > { %v1567_v10 = vpop.f32.mrf.mxu3 }
 0x2b5   : > { %1570 = vrot.lane.b32.xlu1 %v1567_v10, %s2179_s25 }
 0x314   : > { %v1697_v9 = vpop.f32.mrf.mxu1 }
 0x317   : > { %v1521_v14 = vpop.permute.xlu0 %1520 }
 0x318   : > { %v1543_v53 = vadd.f32 %v1542_v50, %v1521_v14 }
 0x31b   : > { %v1732_v52 = vpop.f32.mrf.mxu2 }
 0x31c   : > { %v1733_v32 = vadd.f32 %v1732_v52, %v1697_v9 }
 0x31e   : > { %v1739_v42 = vadd.f32 %v2157_v0, %v1733_v32 }
 0x320   : > { %v1740_v26 = vsub.f32 0.0, %v1739_v42 }
 0x322   : > { %v1741_v49 = vmul.f32 1.442695, %v1740_v26 }
 0x324   : > { %2159 = vpow2.f32 %v1741_v49 }
 0x327   : > { %v1625_v36 = vpop.f32.mrf.mxu3  ;;  %v1571_v27 = vpop.permute.xlu1 %1570 }
 0x328   : > { %v1649_v12 = vadd.f32 %v1648_v11, %v1625_v36  ;;  %v1572_v2 = vadd.f32 %v1571_v27, %v1543_v53 }
 0x32a   : > { %v2160_v38 = vpop.eup %2159  ;;  %v1655_v5 = vadd.f32 %v2158_v43, %v1649_v12  ;;  %v1580_v1 = vadd.f32 %v1578_v46, %v1572_v2 }
 0x32b   : > { %v1743_v51 = vadd.f32 1.0, %v2160_v38 }
 0x32c   : > { %v1656_v55 = vsub.f32 0.0, %v1655_v5  ;;  %v1581_v28 = vsub.f32 0.0, %v1580_v1 }
 0x32d   : > { %2161 = vrcp.f32 %v1743_v51 }
 0x32e   : > { %v1657_v54 = vmul.f32 1.442695, %v1656_v55  ;;  %v1582_v15 = vmul.f32 1.442695, %v1581_v28 }
 0x330   : > { %2163 = vpow2.f32 %v1657_v54 }
 0x331   : > { %2165 = vpow2.f32 %v1582_v15 }
 0x333   : > { %v2162_v39 = vpop.eup %2161 }
 0x334   : > { %1746 = vrot.lane.b32.xlu0 %v2162_v39, %s2179_s25 }
 0x336   : > { %v2164_v18 = vpop.eup %2163 }
 0x337   : > { %v2166_v25 = vpop.eup %2165  ;;  %v1659_v21 = vadd.f32 1.0, %v2164_v18 }
 0x338   : > { %v1584_v16 = vadd.f32 1.0, %v2166_v25 }
 0x339   : > { %2167 = vrcp.f32 %v1659_v21 }
 0x33a   : > { %2169 = vrcp.f32 %v1584_v16 }
 0x33f   : > { %v2168_v56 = vpop.eup %2167 }
 0x340   : > { %v2170_v24 = vpop.eup %2169 }
 0x341   : > { %1586 = vst [vmem:[%s224_s8] sm:$0x3] %v2170_v24 }
 0x342   : > { %1662 = vst.msk [vmem:[%s224_s8] sm:$0x3] %vm1661_vm6, %v2168_v56 }
 0x3a6   : > { %v1747_v30 = vpop.permute.xlu0 %1746 }
 0x3a7   : > { %1750 = vst.msk [vmem:[%s224_s8] sm:$0x3] %vm1749_vm7, %v1747_v30 }
 0x3a8 PF: > { %s17_s20 = sadd.s32 1, %s2177_s20  }
 0x3a9   : > { %p14_p4 = scmp.ge.s32.totalorder %s17_s20, 4  }
 0x3ab   :  { %16 = sbr.rel (!%p14_p4) target bundleno = 3 (0x3), region = 76 }

</bundles_post_ra>
